<compile_context>
chip_gen: v7x
topology: tpu7x:2x2x1
jax: 0.10.0
libtpu: 0.0.40
codegen_flags: <defaults>
</compile_context>

<pallas_src>
import jax
import jax.numpy as jnp
from jax.experimental import pallas as pl
from jax.experimental.pallas import tpu as pltpu


# ---------------------------------------------------------------- BlockSpec helpers
def _const_spec(shape):
    """Whole-array block, same block every grid step (VMEM-resident across layers).

    Constant-index inputs are only DMA'd once, so request single-buffering to avoid
    paying 2x VMEM for their (never-used) second pipeline buffer. Falls back to the
    default if this Pallas version's BlockSpec does not accept pipeline_mode.
    """
    zeros = (0,) * len(shape)
    idx = lambda l, _z=zeros: _z
    try:
        return pl.BlockSpec(shape, idx, pipeline_mode=pl.Buffered(1))
    except TypeError:
        return pl.BlockSpec(shape, idx)


def _layer_spec(shape):
    """Stacked per-layer tensor [nl, ...]: grid step l gets slab l (double-buffered DMA)."""
    tail = (0,) * (len(shape) - 1)
    return pl.BlockSpec((1,) + tuple(shape[1:]), lambda l, _t=tail: (l,) + _t)


# ---------------------------------------------------------------- fused kernel
def fused_rgnn_kernel(x_ref, addx_ref, adj_ref, invd_ref, edge_ref, inc_ref, pool_ref,
                      win_ref, bin_ref,
                      we_ref, be_ref, wm_ref, bm_ref, wupd_ref, bu_ref,
                      gamma_ref, beta_ref,
                      w1_ref, b1_ref, w2_ref, b2_ref,
                      out_ref, h_sc):
    l = pl.program_id(0)
    H = h_sc.shape[1]
    bf = jnp.bfloat16

    # ---- input encoder + additional (random / SignNet) features: first layer step only
    @pl.when(l == 0)
    def _():
        h0 = jnp.dot(x_ref[...], win_ref[...],
                     preferred_element_type=jnp.float32) + bin_ref[...]
        h_sc[...] = jnp.maximum(h0, 0.0) + addx_ref[...]

    h = h_sc[...]

    # ---- edge branch (once per layer, kept out of the node-aggregation math)
    e = jnp.maximum(
        jnp.dot(edge_ref[...], we_ref[0], preferred_element_type=jnp.float32) + be_ref[0],
        0.0)
    e_node = jnp.dot(inc_ref[...], e.astype(bf), preferred_element_type=jnp.float32)   # [N, H]

    # ---- per-source messages (bf16 MXU operands, f32 accumulate / f32 VPU elementwise)
    m = jnp.maximum(
        jnp.dot(h.astype(bf), wm_ref[0], preferred_element_type=jnp.float32) + bm_ref[0],
        0.0)

    # ---- PNA-style aggregators: ONE fused adjacency matmul with 2H-wide RHS [m | m*m]
    #      (fills the 2x256 MXU on v6e/v7x; halves vmatmul pushes and adj vreg traffic on v5e)
    mm = jnp.concatenate([m, m * m], axis=-1).astype(bf)                                # [N, 2H]
    sums = jnp.dot(adj_ref[...], mm, preferred_element_type=jnp.float32)                # [N, 2H]
    s1 = sums[:, 0:H]                                                                   # sum
    s2 = sums[:, H:2 * H]                                                               # sum of sq
    inv_deg = invd_ref[...]
    mean = s1 * inv_deg
    var = jnp.maximum(s2 * inv_deg - mean * mean, 0.0)
    std = jnp.sqrt(var + 1e-5)

    # ---- fused update: [mean | std | sum] @ W_upd as a single K=3H matmul, operand built
    #      in registers (lane-aligned concat, no f32 scratch round-trip through VMEM)
    agg = jnp.concatenate([mean, std, s1], axis=-1).astype(bf)                          # [N, 3H]
    hpre = (jnp.dot(agg, wupd_ref[0], preferred_element_type=jnp.float32)
            + bu_ref[0] + e_node)

    # ---- BatchNorm1d over all nodes (training-mode batch stats), one reduction pass:
    #      var = E[x^2] - mu^2, then ReLU + residual
    mu = jnp.mean(hpre, axis=0, keepdims=True)
    msq = jnp.mean(hpre * hpre, axis=0, keepdims=True)
    var_h = jnp.maximum(msq - mu * mu, 0.0)
    hn = (hpre - mu) * jax.lax.rsqrt(var_h + 1e-5) * gamma_ref[0] + beta_ref[0]
    h_sc[...] = jnp.maximum(hn, 0.0) + h

    # ---- readout fused into the last layer step: sum-pool + 2-layer MLP (lane-padded output)
    @pl.when(l == pl.num_programs(0) - 1)
    def _():
        g = jnp.dot(pool_ref[...], h_sc[...].astype(bf), preferred_element_type=jnp.float32)
        hh = jnp.maximum(
            jnp.dot(g.astype(bf), w1_ref[...], preferred_element_type=jnp.float32)
            + b1_ref[...], 0.0)
        out_ref[...] = jnp.dot(hh.astype(bf), w2_ref[...],
                               preferred_element_type=jnp.float32) + b2_ref[...]


# ---------------------------------------------------------------- params
def init_params(key, node_feat, edge_feat, n_hid, n_out, nl_gnn, out_pad=128):
    def glorot(k, shape):
        fan_in, fan_out = shape[-2], shape[-1]
        scale = jnp.sqrt(2.0 / (fan_in + fan_out))
        return (scale * jax.random.normal(k, shape)).astype(jnp.float32)

    ks = jax.random.split(key, 8)
    params = {
        "W_in": glorot(ks[0], (node_feat, n_hid)),
        "b_in": jnp.zeros((1, n_hid), jnp.float32),
        # per-layer weight stacks [nl, ...]
        "We_s": glorot(ks[1], (nl_gnn, edge_feat, n_hid)),
        "be_s": jnp.zeros((nl_gnn, 1, n_hid), jnp.float32),
        "Wm_s": glorot(ks[2], (nl_gnn, n_hid, n_hid)),
        "bm_s": jnp.zeros((nl_gnn, 1, n_hid), jnp.float32),
        "Wupd_s": glorot(ks[3], (nl_gnn, 3 * n_hid, n_hid)),   # [mean|std|sum] fused weight
        "bu_s": jnp.zeros((nl_gnn, 1, n_hid), jnp.float32),
        "gamma_s": jnp.ones((nl_gnn, 1, n_hid), jnp.float32),
        "beta_s": jnp.zeros((nl_gnn, 1, n_hid), jnp.float32),
        # readout head; W_out2 padded to a full 128-lane output, real columns are [:, :n_out]
        "W_out1": glorot(ks[4], (n_hid, n_hid)),
        "b_out1": jnp.zeros((1, n_hid), jnp.float32),
        "W_out2": jnp.zeros((n_hid, out_pad), jnp.float32).at[:, :n_out].set(
            glorot(ks[5], (n_hid, n_out))),
        "b_out2": jnp.zeros((1, out_pad), jnp.float32),
    }
    return params


# ---------------------------------------------------------------- forward wrapper
def random_gnn_forward(params, x, adj, edge_attr, inc, pool, additional_x, n_out):
    N = x.shape[0]
    H = params["W_in"].shape[1]
    G = pool.shape[0]
    OUT_PAD = params["W_out2"].shape[1]
    nl = params["We_s"].shape[0]
    bf = jnp.bfloat16

    # in-degree reciprocal computed ONCE (not per layer inside the kernel)
    inv_deg = (1.0 / jnp.maximum(jnp.sum(adj, axis=1, keepdims=True), 1.0)).astype(jnp.float32)

    inputs = [
        x.astype(bf),                        # 0   node features
        additional_x.astype(jnp.float32),    # 1   random / SignNet features (added in f32)
        adj.astype(bf),                      # 2   0/1 adjacency, exact in bf16
        inv_deg,                             # 3
        edge_attr.astype(bf),                # 4
        inc.astype(bf),                      # 5
        pool.astype(bf),                     # 6
        params["W_in"].astype(bf),           # 7
        params["b_in"],                      # 8
        params["We_s"].astype(bf),           # 9   per-layer stacks
        params["be_s"],                      # 10
        params["Wm_s"].astype(bf),           # 11
        params["bm_s"],                      # 12
        params["Wupd_s"].astype(bf),         # 13
        params["bu_s"],                      # 14
        params["gamma_s"],                   # 15
        params["beta_s"],                    # 16
        params["W_out1"].astype(bf),         # 17
        params["b_out1"],                    # 18
        params["W_out2"].astype(bf),         # 19
        params["b_out2"],                    # 20
    ]
    per_layer = {9, 10, 11, 12, 13, 14, 15, 16}
    in_specs = [
        _layer_spec(a.shape) if i in per_layer else _const_spec(a.shape)
        for i, a in enumerate(inputs)
    ]

    out_padded = pl.pallas_call(
        fused_rgnn_kernel,
        out_shape=jax.ShapeDtypeStruct((G, OUT_PAD), jnp.float32),
        grid_spec=pltpu.PrefetchScalarGridSpec(
            num_scalar_prefetch=0,
            grid=(nl,),                                     # one grid step per GNN layer
            in_specs=in_specs,
            out_specs=pl.BlockSpec((G, OUT_PAD), lambda l: (0, 0)),
            scratch_shapes=[
                pltpu.VMEM((N, H), jnp.float32),            # node state h, resident across layers
            ],
        ),
        compiler_params=pltpu.CompilerParams(
            dimension_semantics=("arbitrary",),             # sequential layer carry in h scratch
            # 32 MiB is ample for the toy size; for larger N raise toward 64-100 MiB on v5e/v6e
            # and keep <= ~48-56 MiB on v7x (64 MiB physical per TC).
            vmem_limit_bytes=32 * 1024 * 1024,
        ),
    )(*inputs)

    return out_padded[:, :n_out]


# ---------------------------------------------------------------- main
if __name__ == "__main__":
    # small synthetic problem: 2 graphs x 16 nodes, bidirectional rings
    # n_hid = 128 so every VMEM block / store is a full 128-lane vreg row
    node_feat, edge_feat, n_hid, n_out, nl_gnn = 16, 8, 128, 1, 3
    nodes_per_graph, n_graphs = 16, 2
    N = nodes_per_graph * n_graphs

    key = jax.random.PRNGKey(0)
    k_param, k_x, k_e, k_add = jax.random.split(key, 4)

    params = init_params(k_param, node_feat, edge_feat, n_hid, n_out, nl_gnn)

    x = jax.random.normal(k_x, (N, node_feat), dtype=jnp.float32)
    additional_x = 0.1 * jax.random.normal(k_add, (N, n_hid), dtype=jnp.float32)

    # bidirectional ring edges inside each graph
    src_list, dst_list = [], []
    for g in range(n_graphs):
        base = g * nodes_per_graph
        for i in range(nodes_per_graph):
            a, b = base + i, base + (i + 1) % nodes_per_graph
            src_list += [a, b]
            dst_list += [b, a]
    E = len(src_list)                                   # 64 edges
    src = jnp.array(src_list, dtype=jnp.int32)
    dst = jnp.array(dst_list, dtype=jnp.int32)
    edge_attr = jax.random.normal(k_e, (E, edge_feat), dtype=jnp.float32)

    # dense adjacency [dst, src], incidence [dst, edge], sum-pool matrix [graph, node]
    adj = jnp.zeros((N, N), jnp.float32).at[dst, src].add(1.0)
    inc = jnp.zeros((N, E), jnp.float32).at[dst, jnp.arange(E)].set(1.0)
    batch = jnp.repeat(jnp.arange(n_graphs, dtype=jnp.int32), nodes_per_graph)
    pool = (jnp.arange(n_graphs)[:, None] == batch[None, :]).astype(jnp.float32)

    out = random_gnn_forward(params, x, adj, edge_attr, inc, pool, additional_x, n_out)
    out = jax.block_until_ready(out)
    assert out.shape == (n_graphs, n_out) and out.dtype == jnp.float32
    assert bool(jnp.all(jnp.isfinite(out)))
    print("KERNEL_OK")
</pallas_src>

<mosaic_0001>
module attributes {stable_mosaic.version = 11 : i64} {
  func.func @fused_rgnn_kernel(%arg0: i32, %arg1: memref<32x16xbf16, #tpu.memory_space<vmem>>, %arg2: memref<32x128xf32, #tpu.memory_space<vmem>>, %arg3: memref<32x32xbf16, #tpu.memory_space<vmem>>, %arg4: memref<32x1xf32, #tpu.memory_space<vmem>>, %arg5: memref<64x8xbf16, #tpu.memory_space<vmem>>, %arg6: memref<32x64xbf16, #tpu.memory_space<vmem>>, %arg7: memref<2x32xbf16, #tpu.memory_space<vmem>>, %arg8: memref<16x128xbf16, #tpu.memory_space<vmem>>, %arg9: memref<1x128xf32, #tpu.memory_space<vmem>>, %arg10: memref<1x8x128xbf16, #tpu.memory_space<vmem>>, %arg11: memref<1x1x128xf32, #tpu.memory_space<vmem>>, %arg12: memref<1x128x128xbf16, #tpu.memory_space<vmem>>, %arg13: memref<1x1x128xf32, #tpu.memory_space<vmem>>, %arg14: memref<1x384x128xbf16, #tpu.memory_space<vmem>>, %arg15: memref<1x1x128xf32, #tpu.memory_space<vmem>>, %arg16: memref<1x1x128xf32, #tpu.memory_space<vmem>>, %arg17: memref<1x1x128xf32, #tpu.memory_space<vmem>>, %arg18: memref<128x128xbf16, #tpu.memory_space<vmem>>, %arg19: memref<1x128xf32, #tpu.memory_space<vmem>>, %arg20: memref<128x128xbf16, #tpu.memory_space<vmem>>, %arg21: memref<1x128xf32, #tpu.memory_space<vmem>>, %arg22: memref<2x128xf32, #tpu.memory_space<vmem>>, %arg23: memref<32x128xf32, #tpu.memory_space<vmem>>) attributes {dimension_semantics = [#tpu.dimension_semantics<arbitrary>], iteration_bounds = array<i64: 3>, scalar_prefetch = 0 : i64, scratch_operands = 1 : i64, tpu.core_type = #tpu.core_type<tc>, window_params = [{pipeline_mode = #tpu.pipeline_mode<synchronous>, transform_indices = @transform_0, window_bounds = array<i64: 32, 16>}, {pipeline_mode = #tpu.pipeline_mode<synchronous>, transform_indices = @transform_1, window_bounds = array<i64: 32, 128>}, {pipeline_mode = #tpu.pipeline_mode<synchronous>, transform_indices = @transform_2, window_bounds = array<i64: 32, 32>}, {pipeline_mode = #tpu.pipeline_mode<synchronous>, transform_indices = @transform_3, window_bounds = array<i64: 32, 1>}, {pipeline_mode = #tpu.pipeline_mode<synchronous>, transform_indices = @transform_4, window_bounds = array<i64: 64, 8>}, {pipeline_mode = #tpu.pipeline_mode<synchronous>, transform_indices = @transform_5, window_bounds = array<i64: 32, 64>}, {pipeline_mode = #tpu.pipeline_mode<synchronous>, transform_indices = @transform_6, window_bounds = array<i64: 2, 32>}, {pipeline_mode = #tpu.pipeline_mode<synchronous>, transform_indices = @transform_7, window_bounds = array<i64: 16, 128>}, {pipeline_mode = #tpu.pipeline_mode<synchronous>, transform_indices = @transform_8, window_bounds = array<i64: 1, 128>}, {transform_indices = @transform_9, window_bounds = array<i64: 1, 8, 128>}, {transform_indices = @transform_10, window_bounds = array<i64: 1, 1, 128>}, {transform_indices = @transform_11, window_bounds = array<i64: 1, 128, 128>}, {transform_indices = @transform_12, window_bounds = array<i64: 1, 1, 128>}, {transform_indices = @transform_13, window_bounds = array<i64: 1, 384, 128>}, {transform_indices = @transform_14, window_bounds = array<i64: 1, 1, 128>}, {transform_indices = @transform_15, window_bounds = array<i64: 1, 1, 128>}, {transform_indices = @transform_16, window_bounds = array<i64: 1, 1, 128>}, {pipeline_mode = #tpu.pipeline_mode<synchronous>, transform_indices = @transform_17, window_bounds = array<i64: 128, 128>}, {pipeline_mode = #tpu.pipeline_mode<synchronous>, transform_indices = @transform_18, window_bounds = array<i64: 1, 128>}, {pipeline_mode = #tpu.pipeline_mode<synchronous>, transform_indices = @transform_19, window_bounds = array<i64: 128, 128>}, {pipeline_mode = #tpu.pipeline_mode<synchronous>, transform_indices = @transform_20, window_bounds = array<i64: 1, 128>}, {pipeline_mode = #tpu.pipeline_mode<synchronous>, transform_indices = @transform_21, window_bounds = array<i64: 2, 128>}]} {
    %c0_i32 = arith.constant 0 : i32
    %0 = arith.cmpi eq, %arg0, %c0_i32 : i32
    %1 = arith.extui %0 : i1 to i32
    %c0_i32_0 = arith.constant 0 : i32
    %2 = arith.cmpi ne, %1, %c0_i32_0 : i32
    scf.if %2 {
      %c0_52 = arith.constant 0 : index
      %c0_53 = arith.constant 0 : index
      %91 = vector.load %arg1[%c0_52, %c0_53] : memref<32x16xbf16, #tpu.memory_space<vmem>>, vector<32x16xbf16>
      %c0_54 = arith.constant 0 : index
      %c0_55 = arith.constant 0 : index
      %92 = vector.load %arg8[%c0_54, %c0_55] : memref<16x128xbf16, #tpu.memory_space<vmem>>, vector<16x128xbf16>
      %cst_56 = arith.constant dense<0.000000e+00> : vector<32x128xf32>
      %93 = tpu.matmul %91, %92, %cst_56 {dimension_numbers = #tpu.dot_dimension_numbers<[1], [0], [0], [1], [0, 0, 1, 1], [], []>} : vector<32x16xbf16>, vector<16x128xbf16>, vector<32x128xf32> -> vector<32x128xf32>
      %c0_57 = arith.constant 0 : index
      %c0_58 = arith.constant 0 : index
      %94 = vector.load %arg9[%c0_57, %c0_58] : memref<1x128xf32, #tpu.memory_space<vmem>>, vector<1x128xf32>
      %95 = vector.broadcast %94 : vector<1x128xf32> to vector<32x128xf32>
      %96 = arith.addf %93, %95 : vector<32x128xf32>
      %cst_59 = arith.constant 0.000000e+00 : f32
      %97 = vector.broadcast %cst_59 : f32 to vector<32x128xf32>
      %98 = arith.maximumf %96, %97 : vector<32x128xf32>
      %c0_60 = arith.constant 0 : index
      %c0_61 = arith.constant 0 : index
      %99 = vector.load %arg2[%c0_60, %c0_61] : memref<32x128xf32, #tpu.memory_space<vmem>>, vector<32x128xf32>
      %100 = arith.addf %98, %99 : vector<32x128xf32>
      %c0_62 = arith.constant 0 : index
      %c0_63 = arith.constant 0 : index
      %101 = vector.load %arg23[%c0_62, %c0_63] : memref<32x128xf32, #tpu.memory_space<vmem>>, vector<32x128xf32>
      tpu.vector_store %arg23[%c0_62, %c0_63], %100 {strides = array<i32>} : memref<32x128xf32, #tpu.memory_space<vmem>>, vector<32x128xf32>,
    } else {
    }
    %c0 = arith.constant 0 : index
    %c0_1 = arith.constant 0 : index
    %3 = vector.load %arg23[%c0, %c0_1] : memref<32x128xf32, #tpu.memory_space<vmem>>, vector<32x128xf32>
    %c0_2 = arith.constant 0 : index
    %c0_3 = arith.constant 0 : index
    %4 = vector.load %arg5[%c0_2, %c0_3] : memref<64x8xbf16, #tpu.memory_space<vmem>>, vector<64x8xbf16>
    %c0_4 = arith.constant 0 : index
    %c0_5 = arith.constant 0 : index
    %c0_6 = arith.constant 0 : index
    %5 = vector.load %arg10[%c0_4, %c0_5, %c0_6] : memref<1x8x128xbf16, #tpu.memory_space<vmem>>, vector<1x8x128xbf16>
    %6 = vector.shape_cast %5 : vector<1x8x128xbf16> to vector<8x128xbf16>
    %cst = arith.constant dense<0.000000e+00> : vector<64x128xf32>
    %7 = tpu.matmul %4, %6, %cst {dimension_numbers = #tpu.dot_dimension_numbers<[1], [0], [0], [1], [0, 0, 1, 1], [], []>} : vector<64x8xbf16>, vector<8x128xbf16>, vector<64x128xf32> -> vector<64x128xf32>
    %c0_7 = arith.constant 0 : index
    %c0_8 = arith.constant 0 : index
    %c0_9 = arith.constant 0 : index
    %8 = vector.load %arg11[%c0_7, %c0_8, %c0_9] : memref<1x1x128xf32, #tpu.memory_space<vmem>>, vector<1x1x128xf32>
    %9 = vector.shape_cast %8 : vector<1x1x128xf32> to vector<1x128xf32>
    %10 = vector.broadcast %9 : vector<1x128xf32> to vector<64x128xf32>
    %11 = arith.addf %7, %10 : vector<64x128xf32>
    %cst_10 = arith.constant 0.000000e+00 : f32
    %12 = vector.broadcast %cst_10 : f32 to vector<64x128xf32>
    %13 = arith.maximumf %11, %12 : vector<64x128xf32>
    %c0_11 = arith.constant 0 : index
    %c0_12 = arith.constant 0 : index
    %14 = vector.load %arg6[%c0_11, %c0_12] : memref<32x64xbf16, #tpu.memory_space<vmem>>, vector<32x64xbf16>
    %15 = arith.truncf %13 : vector<64x128xf32> to vector<64x128xbf16>
    %cst_13 = arith.constant dense<0.000000e+00> : vector<32x128xf32>
    %16 = tpu.matmul %14, %15, %cst_13 {dimension_numbers = #tpu.dot_dimension_numbers<[1], [0], [0], [1], [0, 0, 1, 1], [], []>} : vector<32x64xbf16>, vector<64x128xbf16>, vector<32x128xf32> -> vector<32x128xf32>
    %17 = arith.truncf %3 : vector<32x128xf32> to vector<32x128xbf16>
    %c0_14 = arith.constant 0 : index
    %c0_15 = arith.constant 0 : index
    %c0_16 = arith.constant 0 : index
    %18 = vector.load %arg12[%c0_14, %c0_15, %c0_16] : memref<1x128x128xbf16, #tpu.memory_space<vmem>>, vector<1x128x128xbf16>
    %19 = vector.shape_cast %18 : vector<1x128x128xbf16> to vector<128x128xbf16>
    %cst_17 = arith.constant dense<0.000000e+00> : vector<32x128xf32>
    %20 = tpu.matmul %17, %19, %cst_17 {dimension_numbers = #tpu.dot_dimension_numbers<[1], [0], [0], [1], [0, 0, 1, 1], [], []>} : vector<32x128xbf16>, vector<128x128xbf16>, vector<32x128xf32> -> vector<32x128xf32>
    %c0_18 = arith.constant 0 : index
    %c0_19 = arith.constant 0 : index
    %c0_20 = arith.constant 0 : index
    %21 = vector.load %arg13[%c0_18, %c0_19, %c0_20] : memref<1x1x128xf32, #tpu.memory_space<vmem>>, vector<1x1x128xf32>
    %22 = vector.shape_cast %21 : vector<1x1x128xf32> to vector<1x128xf32>
    %23 = vector.broadcast %22 : vector<1x128xf32> to vector<32x128xf32>
    %24 = arith.addf %20, %23 : vector<32x128xf32>
    %cst_21 = arith.constant 0.000000e+00 : f32
    %25 = vector.broadcast %cst_21 : f32 to vector<32x128xf32>
    %26 = arith.maximumf %24, %25 : vector<32x128xf32>
    %27 = arith.mulf %26, %26 : vector<32x128xf32>
    %28 = tpu.concatenate %26, %27 in 1 : vector<32x128xf32>, vector<32x128xf32> -> vector<32x256xf32>
    %29 = arith.truncf %28 : vector<32x256xf32> to vector<32x256xbf16>
    %c0_22 = arith.constant 0 : index
    %c0_23 = arith.constant 0 : index
    %30 = vector.load %arg3[%c0_22, %c0_23] : memref<32x32xbf16, #tpu.memory_space<vmem>>, vector<32x32xbf16>
    %cst_24 = arith.constant dense<0.000000e+00> : vector<32x256xf32>
    %31 = tpu.matmul %30, %29, %cst_24 {dimension_numbers = #tpu.dot_dimension_numbers<[1], [0], [0], [1], [0, 0, 1, 1], [], []>} : vector<32x32xbf16>, vector<32x256xbf16>, vector<32x256xf32> -> vector<32x256xf32>
    %32 = vector.extract_strided_slice %31 {offsets = [0, 0], sizes = [32, 128], strides = [1, 1]} : vector<32x256xf32> to vector<32x128xf32>
    %33 = vector.extract_strided_slice %31 {offsets = [0, 128], sizes = [32, 128], strides = [1, 1]} : vector<32x256xf32> to vector<32x128xf32>
    %c0_25 = arith.constant 0 : index
    %c0_26 = arith.constant 0 : index
    %34 = vector.load %arg4[%c0_25, %c0_26] : memref<32x1xf32, #tpu.memory_space<vmem>>, vector<32x1xf32>
    %35 = vector.broadcast %34 : vector<32x1xf32> to vector<32x128xf32>
    %36 = arith.mulf %32, %35 : vector<32x128xf32>
    %37 = vector.broadcast %34 : vector<32x1xf32> to vector<32x128xf32>
    %38 = arith.mulf %33, %37 : vector<32x128xf32>
    %39 = arith.mulf %36, %36 : vector<32x128xf32>
    %40 = arith.subf %38, %39 : vector<32x128xf32>
    %cst_27 = arith.constant 0.000000e+00 : f32
    %41 = vector.broadcast %cst_27 : f32 to vector<32x128xf32>
    %42 = arith.maximumf %40, %41 : vector<32x128xf32>
    %cst_28 = arith.constant 9.99999974E-6 : f32
    %43 = vector.broadcast %cst_28 : f32 to vector<32x128xf32>
    %44 = arith.addf %42, %43 : vector<32x128xf32>
    %45 = math.sqrt %44 : vector<32x128xf32>
    %46 = tpu.concatenate %36, %45, %32 in 1 : vector<32x128xf32>, vector<32x128xf32>, vector<32x128xf32> -> vector<32x384xf32>
    %47 = arith.truncf %46 : vector<32x384xf32> to vector<32x384xbf16>
    %c0_29 = arith.constant 0 : index
    %c0_30 = arith.constant 0 : index
    %c0_31 = arith.constant 0 : index
    %48 = vector.load %arg14[%c0_29, %c0_30, %c0_31] : memref<1x384x128xbf16, #tpu.memory_space<vmem>>, vector<1x384x128xbf16>
    %49 = vector.shape_cast %48 : vector<1x384x128xbf16> to vector<384x128xbf16>
    %cst_32 = arith.constant dense<0.000000e+00> : vector<32x128xf32>
    %50 = tpu.matmul %47, %49, %cst_32 {dimension_numbers = #tpu.dot_dimension_numbers<[1], [0], [0], [1], [0, 0, 1, 1], [], []>} : vector<32x384xbf16>, vector<384x128xbf16>, vector<32x128xf32> -> vector<32x128xf32>
    %c0_33 = arith.constant 0 : index
    %c0_34 = arith.constant 0 : index
    %c0_35 = arith.constant 0 : index
    %51 = vector.load %arg15[%c0_33, %c0_34, %c0_35] : memref<1x1x128xf32, #tpu.memory_space<vmem>>, vector<1x1x128xf32>
    %52 = vector.shape_cast %51 : vector<1x1x128xf32> to vector<1x128xf32>
    %53 = vector.broadcast %52 : vector<1x128xf32> to vector<32x128xf32>
    %54 = arith.addf %50, %53 : vector<32x128xf32>
    %55 = arith.addf %54, %16 : vector<32x128xf32>
    %cst_36 = arith.constant dense<0.000000e+00> : vector<128xf32>
    %56 = vector.multi_reduction <add>, %55, %cst_36 [0] : vector<32x128xf32> to vector<128xf32>
    %57 = vector.shape_cast %56 : vector<128xf32> to vector<1x128xf32>
    %cst_37 = arith.constant 3.200000e+01 : f32
    %58 = vector.broadcast %cst_37 : f32 to vector<1x128xf32>
    %59 = arith.divf %57, %58 : vector<1x128xf32>
    %60 = arith.mulf %55, %55 : vector<32x128xf32>
    %cst_38 = arith.constant dense<0.000000e+00> : vector<128xf32>
    %61 = vector.multi_reduction <add>, %60, %cst_38 [0] : vector<32x128xf32> to vector<128xf32>
    %62 = vector.shape_cast %61 : vector<128xf32> to vector<1x128xf32>
    %cst_39 = arith.constant 3.200000e+01 : f32
    %63 = vector.broadcast %cst_39 : f32 to vector<1x128xf32>
    %64 = arith.divf %62, %63 : vector<1x128xf32>
    %65 = arith.mulf %59, %59 : vector<1x128xf32>
    %66 = arith.subf %64, %65 : vector<1x128xf32>
    %cst_40 = arith.constant 0.000000e+00 : f32
    %67 = vector.broadcast %cst_40 : f32 to vector<1x128xf32>
    %68 = arith.maximumf %66, %67 : vector<1x128xf32>
    %69 = vector.broadcast %59 : vector<1x128xf32> to vector<32x128xf32>
    %70 = arith.subf %55, %69 : vector<32x128xf32>
    %cst_41 = arith.constant 9.99999974E-6 : f32
    %71 = vector.broadcast %cst_41 : f32 to vector<1x128xf32>
    %72 = arith.addf %68, %71 : vector<1x128xf32>
    %73 = math.rsqrt %72 : vector<1x128xf32>
    %74 = vector.broadcast %73 : vector<1x128xf32> to vector<32x128xf32>
    %75 = arith.mulf %70, %74 : vector<32x128xf32>
    %c0_42 = arith.constant 0 : index
    %c0_43 = arith.constant 0 : index
    %c0_44 = arith.constant 0 : index
    %76 = vector.load %arg16[%c0_42, %c0_43, %c0_44] : memref<1x1x128xf32, #tpu.memory_space<vmem>>, vector<1x1x128xf32>
    %77 = vector.shape_cast %76 : vector<1x1x128xf32> to vector<1x128xf32>
    %78 = vector.broadcast %77 : vector<1x128xf32> to vector<32x128xf32>
    %79 = arith.mulf %75, %78 : vector<32x128xf32>
    %c0_45 = arith.constant 0 : index
    %c0_46 = arith.constant 0 : index
    %c0_47 = arith.constant 0 : index
    %80 = vector.load %arg17[%c0_45, %c0_46, %c0_47] : memref<1x1x128xf32, #tpu.memory_space<vmem>>, vector<1x1x128xf32>
    %81 = vector.shape_cast %80 : vector<1x1x128xf32> to vector<1x128xf32>
    %82 = vector.broadcast %81 : vector<1x128xf32> to vector<32x128xf32>
    %83 = arith.addf %79, %82 : vector<32x128xf32>
    %cst_48 = arith.constant 0.000000e+00 : f32
    %84 = vector.broadcast %cst_48 : f32 to vector<32x128xf32>
    %85 = arith.maximumf %83, %84 : vector<32x128xf32>
    %86 = arith.addf %85, %3 : vector<32x128xf32>
    %c0_49 = arith.constant 0 : index
    %c0_50 = arith.constant 0 : index
    %87 = vector.load %arg23[%c0_49, %c0_50] : memref<32x128xf32, #tpu.memory_space<vmem>>, vector<32x128xf32>
    tpu.vector_store %arg23[%c0_49, %c0_50], %86 {strides = array<i32>} : memref<32x128xf32, #tpu.memory_space<vmem>>, vector<32x128xf32>,
    %c2_i32 = arith.constant 2 : i32
    %88 = arith.cmpi eq, %arg0, %c2_i32 : i32
    %89 = arith.extui %88 : i1 to i32
    %c0_i32_51 = arith.constant 0 : i32
    %90 = arith.cmpi ne, %89, %c0_i32_51 : i32
    scf.if %90 {
      %c0_52 = arith.constant 0 : index
      %c0_53 = arith.constant 0 : index
      %91 = vector.load %arg7[%c0_52, %c0_53] : memref<2x32xbf16, #tpu.memory_space<vmem>>, vector<2x32xbf16>
      %c0_54 = arith.constant 0 : index
      %c0_55 = arith.constant 0 : index
      %92 = vector.load %arg23[%c0_54, %c0_55] : memref<32x128xf32, #tpu.memory_space<vmem>>, vector<32x128xf32>
      %93 = arith.truncf %92 : vector<32x128xf32> to vector<32x128xbf16>
      %cst_56 = arith.constant dense<0.000000e+00> : vector<2x128xf32>
      %94 = tpu.matmul %91, %93, %cst_56 {dimension_numbers = #tpu.dot_dimension_numbers<[1], [0], [0], [1], [0, 0, 1, 1], [], []>} : vector<2x32xbf16>, vector<32x128xbf16>, vector<2x128xf32> -> vector<2x128xf32>
      %95 = arith.truncf %94 : vector<2x128xf32> to vector<2x128xbf16>
      %c0_57 = arith.constant 0 : index
      %c0_58 = arith.constant 0 : index
      %96 = vector.load %arg18[%c0_57, %c0_58] : memref<128x128xbf16, #tpu.memory_space<vmem>>, vector<128x128xbf16>
      %cst_59 = arith.constant dense<0.000000e+00> : vector<2x128xf32>
      %97 = tpu.matmul %95, %96, %cst_59 {dimension_numbers = #tpu.dot_dimension_numbers<[1], [0], [0], [1], [0, 0, 1, 1], [], []>} : vector<2x128xbf16>, vector<128x128xbf16>, vector<2x128xf32> -> vector<2x128xf32>
      %c0_60 = arith.constant 0 : index
      %c0_61 = arith.constant 0 : index
      %98 = vector.load %arg19[%c0_60, %c0_61] : memref<1x128xf32, #tpu.memory_space<vmem>>, vector<1x128xf32>
      %99 = vector.broadcast %98 : vector<1x128xf32> to vector<2x128xf32>
      %100 = arith.addf %97, %99 : vector<2x128xf32>
      %cst_62 = arith.constant 0.000000e+00 : f32
      %101 = vector.broadcast %cst_62 : f32 to vector<2x128xf32>
      %102 = arith.maximumf %100, %101 : vector<2x128xf32>
      %103 = arith.truncf %102 : vector<2x128xf32> to vector<2x128xbf16>
      %c0_63 = arith.constant 0 : index
      %c0_64 = arith.constant 0 : index
      %104 = vector.load %arg20[%c0_63, %c0_64] : memref<128x128xbf16, #tpu.memory_space<vmem>>, vector<128x128xbf16>
      %cst_65 = arith.constant dense<0.000000e+00> : vector<2x128xf32>
      %105 = tpu.matmul %103, %104, %cst_65 {dimension_numbers = #tpu.dot_dimension_numbers<[1], [0], [0], [1], [0, 0, 1, 1], [], []>} : vector<2x128xbf16>, vector<128x128xbf16>, vector<2x128xf32> -> vector<2x128xf32>
      %c0_66 = arith.constant 0 : index
      %c0_67 = arith.constant 0 : index
      %106 = vector.load %arg21[%c0_66, %c0_67] : memref<1x128xf32, #tpu.memory_space<vmem>>, vector<1x128xf32>
      %107 = vector.broadcast %106 : vector<1x128xf32> to vector<2x128xf32>
      %108 = arith.addf %105, %107 : vector<2x128xf32>
      %c0_68 = arith.constant 0 : index
      %c0_69 = arith.constant 0 : index
      %109 = vector.load %arg22[%c0_68, %c0_69] : memref<2x128xf32, #tpu.memory_space<vmem>>, vector<2x128xf32>
      tpu.vector_store %arg22[%c0_68, %c0_69], %108 {strides = array<i32>} : memref<2x128xf32, #tpu.memory_space<vmem>>, vector<2x128xf32>,
    } else {
    }
    return
  }
  func.func @transform_0(%arg0: i32) -> (i32, i32) {
    %c0_i32 = arith.constant 0 : i32
    %c0_i32_0 = arith.constant 0 : i32
    %c0_i32_1 = arith.constant 0 : i32
    return %c0_i32, %c0_i32_0 : i32, i32
  }
  func.func @transform_1(%arg0: i32) -> (i32, i32) {
    %c0_i32 = arith.constant 0 : i32
    %c0_i32_0 = arith.constant 0 : i32
    %c0_i32_1 = arith.constant 0 : i32
    return %c0_i32, %c0_i32_0 : i32, i32
  }
  func.func @transform_2(%arg0: i32) -> (i32, i32) {
    %c0_i32 = arith.constant 0 : i32
    %c0_i32_0 = arith.constant 0 : i32
    %c0_i32_1 = arith.constant 0 : i32
    return %c0_i32, %c0_i32_0 : i32, i32
  }
  func.func @transform_3(%arg0: i32) -> (i32, i32) {
    %c0_i32 = arith.constant 0 : i32
    %c0_i32_0 = arith.constant 0 : i32
    %c0_i32_1 = arith.constant 0 : i32
    return %c0_i32, %c0_i32_0 : i32, i32
  }
  func.func @transform_4(%arg0: i32) -> (i32, i32) {
    %c0_i32 = arith.constant 0 : i32
    %c0_i32_0 = arith.constant 0 : i32
    %c0_i32_1 = arith.constant 0 : i32
    return %c0_i32, %c0_i32_0 : i32, i32
  }
  func.func @transform_5(%arg0: i32) -> (i32, i32) {
    %c0_i32 = arith.constant 0 : i32
    %c0_i32_0 = arith.constant 0 : i32
    %c0_i32_1 = arith.constant 0 : i32
    return %c0_i32, %c0_i32_0 : i32, i32
  }
  func.func @transform_6(%arg0: i32) -> (i32, i32) {
    %c0_i32 = arith.constant 0 : i32
    %c0_i32_0 = arith.constant 0 : i32
    %c0_i32_1 = arith.constant 0 : i32
    return %c0_i32, %c0_i32_0 : i32, i32
  }
  func.func @transform_7(%arg0: i32) -> (i32, i32) {
    %c0_i32 = arith.constant 0 : i32
    %c0_i32_0 = arith.constant 0 : i32
    %c0_i32_1 = arith.constant 0 : i32
    return %c0_i32, %c0_i32_0 : i32, i32
  }
  func.func @transform_8(%arg0: i32) -> (i32, i32) {
    %c0_i32 = arith.constant 0 : i32
    %c0_i32_0 = arith.constant 0 : i32
    %c0_i32_1 = arith.constant 0 : i32
    return %c0_i32, %c0_i32_0 : i32, i32
  }
  func.func @transform_9(%arg0: i32) -> (i32, i32, i32) {
    %c0_i32 = arith.constant 0 : i32
    %c0_i32_0 = arith.constant 0 : i32
    %c0_i32_1 = arith.constant 0 : i32
    return %arg0, %c0_i32, %c0_i32_0 : i32, i32, i32
  }
  func.func @transform_10(%arg0: i32) -> (i32, i32, i32) {
    %c0_i32 = arith.constant 0 : i32
    %c0_i32_0 = arith.constant 0 : i32
    %c0_i32_1 = arith.constant 0 : i32
    return %arg0, %c0_i32, %c0_i32_0 : i32, i32, i32
  }
  func.func @transform_11(%arg0: i32) -> (i32, i32, i32) {
    %c0_i32 = arith.constant 0 : i32
    %c0_i32_0 = arith.constant 0 : i32
    %c0_i32_1 = arith.constant 0 : i32
    return %arg0, %c0_i32, %c0_i32_0 : i32, i32, i32
  }
  func.func @transform_12(%arg0: i32) -> (i32, i32, i32) {
    %c0_i32 = arith.constant 0 : i32
    %c0_i32_0 = arith.constant 0 : i32
    %c0_i32_1 = arith.constant 0 : i32
    return %arg0, %c0_i32, %c0_i32_0 : i32, i32, i32
  }
  func.func @transform_13(%arg0: i32) -> (i32, i32, i32) {
    %c0_i32 = arith.constant 0 : i32
    %c0_i32_0 = arith.constant 0 : i32
    %c0_i32_1 = arith.constant 0 : i32
    return %arg0, %c0_i32, %c0_i32_0 : i32, i32, i32
  }
  func.func @transform_14(%arg0: i32) -> (i32, i32, i32) {
    %c0_i32 = arith.constant 0 : i32
    %c0_i32_0 = arith.constant 0 : i32
    %c0_i32_1 = arith.constant 0 : i32
    return %arg0, %c0_i32, %c0_i32_0 : i32, i32, i32
  }
  func.func @transform_15(%arg0: i32) -> (i32, i32, i32) {
    %c0_i32 = arith.constant 0 : i32
    %c0_i32_0 = arith.constant 0 : i32
    %c0_i32_1 = arith.constant 0 : i32
    return %arg0, %c0_i32, %c0_i32_0 : i32, i32, i32
  }
  func.func @transform_16(%arg0: i32) -> (i32, i32, i32) {
    %c0_i32 = arith.constant 0 : i32
    %c0_i32_0 = arith.constant 0 : i32
    %c0_i32_1 = arith.constant 0 : i32
    return %arg0, %c0_i32, %c0_i32_0 : i32, i32, i32
  }
  func.func @transform_17(%arg0: i32) -> (i32, i32) {
    %c0_i32 = arith.constant 0 : i32
    %c0_i32_0 = arith.constant 0 : i32
    %c0_i32_1 = arith.constant 0 : i32
    return %c0_i32, %c0_i32_0 : i32, i32
  }
  func.func @transform_18(%arg0: i32) -> (i32, i32) {
    %c0_i32 = arith.constant 0 : i32
    %c0_i32_0 = arith.constant 0 : i32
    %c0_i32_1 = arith.constant 0 : i32
    return %c0_i32, %c0_i32_0 : i32, i32
  }
  func.func @transform_19(%arg0: i32) -> (i32, i32) {
    %c0_i32 = arith.constant 0 : i32
    %c0_i32_0 = arith.constant 0 : i32
    %c0_i32_1 = arith.constant 0 : i32
    return %c0_i32, %c0_i32_0 : i32, i32
  }
  func.func @transform_20(%arg0: i32) -> (i32, i32) {
    %c0_i32 = arith.constant 0 : i32
    %c0_i32_0 = arith.constant 0 : i32
    %c0_i32_1 = arith.constant 0 : i32
    return %c0_i32, %c0_i32_0 : i32, i32
  }
  func.func @transform_21(%arg0: i32) -> (i32, i32) {
    %c0_i32 = arith.constant 0 : i32
    %c0_i32_0 = arith.constant 0 : i32
    %c0_i32_1 = arith.constant 0 : i32
    return %c0_i32, %c0_i32_0 : i32, i32
  }
}

</mosaic_0001>

<bundles_post_ra>
// kernel: tpu_custom_call.1
= control target key start
LH: loop header
LB: loop body
LE: loop exit
PB: predicated region body
PF: predicated region fallthrough
CT: control target
= control target key end

     0   :  { %s4010_s0 = inlined_call_operand.vmem [shape: bf16[32,16], index: 0, kind: input, shape index: {}]   ;;  %s4011_s1 = inlined_call_operand.hbm [shape: f32[32,128], index: 1, kind: input, shape index: {}]   ;;  %s4012_s2 = inlined_call_operand.hbm [shape: bf16[32,32], index: 2, kind: input, shape index: {}]   ;;  %s4013_s3 = inlined_call_operand.vmem [shape: f32[32,1], index: 3, kind: input, shape index: {}]   ;;  %s4014_s4 = inlined_call_operand.vmem [shape: bf16[64,8], index: 4, kind: input, shape index: {}]   ;;  %s4015_s5 = inlined_call_operand.hbm [shape: bf16[32,64], index: 5, kind: input, shape index: {}]   ;;  %s4016_s6 = inlined_call_operand.hbm [shape: bf16[2,32], index: 6, kind: input, shape index: {}]   ;;  %s4017_s7 = inlined_call_operand.hbm [shape: bf16[16,128], index: 7, kind: input, shape index: {}]   ;;  %s4018_s8 = inlined_call_operand.hbm [shape: f32[1,128], index: 8, kind: input, shape index: {}]   ;;  %s4019_s9 = inlined_call_operand.hbm [shape: bf16[3,8,128], index: 9, kind: input, shape index: {}]   ;;  %s4020_s10 = inlined_call_operand.hbm [shape: f32[3,1,128], index: 10, kind: input, shape index: {}]   ;;  %s4021_s11 = inlined_call_operand.hbm [shape: bf16[3,128,128], index: 11, kind: input, shape index: {}]   ;;  %s4022_s12 = inlined_call_operand.vmem [shape: f32[3,1,128], index: 12, kind: input, shape index: {}]   ;;  %s4023_s13 = inlined_call_operand.hbm [shape: bf16[3,384,128], index: 13, kind: input, shape index: {}]   ;;  %s4024_s14 = inlined_call_operand.vmem [shape: f32[3,1,128], index: 14, kind: input, shape index: {}]   ;;  %s4025_s15 = inlined_call_operand.vmem [shape: f32[3,1,128], index: 15, kind: input, shape index: {}]   ;;  %s4026_s16 = inlined_call_operand.vmem [shape: f32[3,1,128], index: 16, kind: input, shape index: {}]   ;;  %s4027_s17 = inlined_call_operand.vmem [shape: bf16[128,128], index: 17, kind: input, shape index: {}]   ;;  %s4028_s18 = inlined_call_operand.vmem [shape: f32[1,128], index: 18, kind: input, shape index: {}]   ;;  %s4029_s19 = inlined_call_operand.vmem [shape: bf16[128,128], index: 19, kind: input, shape index: {}]   ;;  %s4030_s20 = inlined_call_operand.vmem [shape: f32[1,128], index: 20, kind: input, shape index: {}]   ;;  %s4031_s21 = inlined_call_operand.hbm [shape: f32[2,128], index: 21, kind: output, shape index: {}]  }
   0x1   :  { %4061 = sst [smem:[#allocation30_spill]] %s4010_s0 }
   0x2   :  { %4062 = sst [smem:[#allocation31_spill]] %s4011_s1 }
   0x3   :  { %4063 = sst [smem:[#allocation32_spill]] %s4012_s2 }
   0x4   :  { %4064 = sst [smem:[#allocation33_spill]] %s4013_s3 }
   0x5   :  { %4065 = sst [smem:[#allocation34_spill]] %s4014_s4 }
   0x6   :  { %4066 = sst [smem:[#allocation35_spill]] %s4015_s5 }
   0x7   :  { %4067 = sst [smem:[#allocation36_spill]] %s4019_s9 }
   0x8   :  { %4068 = sst [smem:[#allocation37_spill]] %s4020_s10 }
   0x9   :  { %4069 = sst [smem:[#allocation38_spill]] %s4022_s12 }
   0xa   :  { %4070 = sst [smem:[#allocation39_spill]] %s4024_s14 }
   0xb   :  { %4071 = sst [smem:[#allocation40_spill]] %s4025_s15 }
   0xc   :  { %4072 = sst [smem:[#allocation41_spill]] %s4026_s16 }
   0xd   :  { %4073 = sst [smem:[#allocation42_spill]] %s4027_s17 }
   0xe   :  { %4074 = sst [smem:[#allocation43_spill]] %s4028_s18 }
   0xf   :  { %4075 = sst [smem:[#allocation44_spill]] %s4029_s19 }
  0x10   :  { %4076 = sst [smem:[#allocation45_spill]] %s4030_s20 }
  0x11   :  { %4077 = sst [smem:[#allocation46_spill]] %s4031_s21 }
  0x12   :  { %26 = vsyncpa [#allocation4], 0 }
  0x13   :  { %27 = vsyncpa [#allocation7], 0 }
  0x14   :  { %28 = vsyncpa [#allocation10], 0 }
  0x15   :  { %29 = vsyncpa [#allocation13], 0 }
  0x16   :  { %30 = vsyncpa [#allocation5], 0  ;;  %s3381_s2 = smov 0   ;;  %s3383_s25 = smov 0  }
  0x17   :  { %s3385_s26 = smov 0   ;;  %s3387_s27 = smov 0  }
  0x18 LB: > { %4078 = sst [smem:[#allocation25_spill]] %s3243_s25  ;;  %s3253_s3 = smov [#allocation3]   ;;  %s3251_s27 = sphi %s3387_s27, %s4134_s27   ;;  %s3247_s26 = sphi %s3385_s26, %s4137_s26   ;;  %s3243_s25 = sphi %s3383_s25, %s4136_s25   ;;  %s3239_s2 = sphi %s3381_s2, %s4135_s2  }
  0x19   : > { %4079 = sst [smem:[#allocation26_spill]] %s3247_s26  ;;  %s558_s28 = sshll.u32 %s3253_s3, 4  ;;  %s559_s28 = int_to_ptr.vmem [resolvable:$true] %s558_s28 }
  0x1a   : > { %s3402_s29 = sadd.s32 4294967295, %s3251_s27   ;;  %p2363_p0 = scmp.ge.s32.totalorder %s3251_s27, 1 }
  0x1b   : > { %p4039_p1 = scmp.eq.s32.totalorder %s3402_s29, 0  ;;  %p543_p2 = scmp.lt.s32.totalorder %s3251_s27, 4 }
  0x1c   : > { %s3421_s30 = sadd.s32 1, %s3251_s27   ;;  %s4083_s23 = sld [smem:[#allocation31_spill]] }
  0x1d   : > { %p3408_p4 = pnand %p2363_p0, %p543_p2  ;;  %4082 = sst [smem:[#allocation27_spill]] %s3421_s30 }
  0x1f   : > { %s4080_s0 = scalar_select %p3408_p4, 1, 0 }
  0x20   : > { %p2719_p5 = pneg %p3408_p4 }
  0x22   : > { %p3416_p6 = pnand %p2719_p5, %p4039_p1  ;;  %s2883_s1 = scalar_lea.hbm %s4083_s23, 512 }
  0x23   : > { %p2884_p7 = scmp.ne.s32.totalorder %s4083_s23, %s2883_s1  ;;  %p2890_p11 = scmp.lt.u32.totalorder %s2883_s1, %s4083_s23 }
  0x24   : > { %s4081_s4 = scalar_select %p3416_p6, 1, 0 }
  0x25   : > { %p3431_p8 = pneg %p3416_p6 }
  0x27   : > { %s4084_s21 = scalar_select %p3431_p8, 1, 0 }
  0x28   : > { %p2886_p9 = pnand %p3431_p8, %p2884_p7 }
  0x2a   : > { %p2887_p10 = pneg %p2886_p9 }
  0x2c   : > { %p2892_p12 = pnand %p2890_p11, %p2887_p10 }
  0x2e   : > { %2895 = shalt.err (!%p2892_p12)
}
  0x2f   : > { %s2896_s5 = scalar_lea.vmem %s559_s28, 512  ;;  %p2904_p5 = scmp.lt.s32.totalorder %s559_s28, %s559_s28 }
  0x30   : > { %p2897_p13 = scmp.ne.s32.totalorder %s559_s28, %s2896_s5  ;;  %p2905_p3 = scmp.lt.s32.totalorder %s2896_s5, %s2896_s5 }
  0x32   : > { %p2899_p0 = pnand %p2897_p13, %p3431_p8  ;;  %p2906_p1 = por %p2905_p3, %p2904_p5 }
  0x34   : > { %p2900_p2 = pneg %p2899_p0 }
  0x36   : > { %p2907_p4 = pnand %p2906_p1, %p2900_p2 }
  0x38   : > { %2910 = shalt.err (!%p2907_p4)
}
  0x39   : > { %s3254_s22 = smov 128   ;;  %s3255_s18 = smov 8  }
  0x3a   : > { %2722 = dma.hbm_to_vmem [thread:$0]  (!%p3416_p6), %s4083_s23, 512, %s559_s28, [#allocation4], %s3254_s22, %s3254_s22, %s3255_s18  }
  0x3b   : > { %s229_s24 = ssub.s32 %s3251_s27, %s3421_s30  ;;  %s232_s3 = sadd.s32 1, %s3247_s26 }
  0x3c   : > { %p230_p1 = scmp.eq.s32.totalorder %s229_s24, 0  ;;  %p239_p3 = scmp.ne.s32.totalorder %s3247_s26, %s3243_s25 }
  0x3d   : > { %p240_p4 = scmp.eq.s32.totalorder %s3251_s27, 0  ;;  %p245_p7 = scmp.ne.s32.totalorder %s3243_s25, %s3239_s2 }
  0x3e   : > { %s3456_s5 = scalar_select %p230_p1, %s3247_s26, %s232_s3  }
  0x3f   : > { %p241_p9 = por %p240_p4, %p239_p3  ;;  %p4086_p10 = scmp.eq.s32.totalorder %s3402_s29, 0 }
  0x40   : > { %4085 = sst [smem:[#allocation28_spill]] %s3456_s5  ;;  %p2757_p12 = scmp.lt.s32.totalorder %s3251_s27, 3 }
  0x41   : > { %p3460_p11 = por %p4086_p10, %p245_p7  ;;  %s651_s17 = sand.u32 1, %s3251_s27  }
  0x42   : > { %s3467_s16 = sand.u32 1, %s3247_s26   ;;  %s2372_s22 = sshll.u32 %s3251_s27, 6 }
  0x43   : > { %s4087_s19 = scalar_select %p3460_p11, 1, 0 }
  0x44   : > { %s2371_s28 = sshll.u32 %s3467_s16, 2  ;;  %s4089_s9 = sld [smem:[#allocation36_spill]] }
  0x45   : > { %4088 = sst [smem:[#allocation29_spill]] %s4087_s19  ;;  %s655_s2 = scalar_lea.vmem [#allocation14], %s2371_s28 }
  0x46   : > { %s662_s24 = sshll.u32 %s655_s2, 4  ;;  %p3476_p13 = pnand %p2757_p12, %p241_p9  ;;  %s3480_s24 = int_to_ptr.vmem [resolvable:$true] %s662_s24 }
  0x47   : > { %s2373_s23 = sshll.u32 %s3251_s27, 4  ;;  %s3483_s5 = scalar_lea.sflag [#allocation4], %s651_s17 }
  0x48   : > { %s4090_s3 = scalar_select %p3476_p13, 1, 0 }
  0x49   : > { %p3489_p2 = pneg %p3476_p13 }
  0x4a   : > { %s3474_s1 = scalar_lea.hbm %s4089_s9, %s2372_s22  ;;  %s2916_s20 = scalar_lea.hbm %s4089_s9, 192 }
  0x4b   : > { %s2911_s26 = scalar_lea.hbm %s3474_s1, 64  ;;  %p2917_p3 = scmp.lt.u32.totalorder %s3474_s1, %s4089_s9 }
  0x4c   : > { %p2912_p0 = scmp.ne.s32.totalorder %s3474_s1, %s2911_s26  ;;  %p2918_p4 = scmp.lt.u32.totalorder %s2916_s20, %s2911_s26 }
  0x4d   : > { %s4091_s22 = scalar_select %p3489_p2, 1, 0 }
  0x4e   : > { %p2914_p5 = pnand %p3489_p2, %p2912_p0  ;;  %p2919_p7 = por %p2918_p4, %p2917_p3 }
  0x4f   : > { %p2920_p9 = scmp.lt.u32.totalorder %s2911_s26, %s3474_s1 }
  0x50   : > { %p2915_p1 = pneg %p2914_p5 }
  0x51   : > { %p2921_p10 = por %p2920_p9, %p2919_p7 }
  0x53   : > { %p2922_p12 = pnand %p2921_p10, %p2915_p1 }
  0x55   : > { %2925 = shalt.err (!%p2922_p12)
}
  0x56   : > { %s2926_s17 = scalar_lea.vmem %s3480_s24, 64  ;;  %s3256_s28 = smov [#allocation14]  }
  0x57   : > { %p2927_p0 = scmp.ne.s32.totalorder %s3480_s24, %s2926_s17  ;;  %s2931_s18 = sshll.u32 %s3256_s28, 4  ;;  %s2932_s18 = int_to_ptr.vmem [resolvable:$false] %s2931_s18 }
  0x58   : > { %s2933_s30 = scalar_lea.vmem %s2932_s18, 128  ;;  %p2934_p6 = scmp.lt.s32.totalorder %s3480_s24, %s2932_s18 }
  0x59   : > { %p2929_p5 = pnand %p2927_p0, %p3489_p2  ;;  %p2935_p8 = scmp.lt.s32.totalorder %s2933_s30, %s2926_s17 }
  0x5b   : > { %p2930_p11 = pneg %p2929_p5  ;;  %p2936_p3 = por %p2935_p8, %p2934_p6 }
  0x5d   : > { %p2937_p4 = pnand %p2936_p3, %p2930_p11 }
  0x5f   : > { %2940 = shalt.err (!%p2937_p4)
}
  0x60   : > { %2741 = dma.hbm_to_vmem [thread:$0]  (!%p3476_p13), %s3474_s1, 64, %s3480_s24, %s3483_s5  }
  0x61   : > { %s4092_s10 = sld [smem:[#allocation37_spill]]  ;;  %s672_s17 = scalar_lea.vmem [#allocation15], %s3467_s16 }
  0x62   : > { %s679_s28 = sshll.u32 %s672_s17, 4  ;;  %s680_s28 = int_to_ptr.vmem [resolvable:$true] %s679_s28 }
  0x67   : > { %s3518_s2 = scalar_lea.hbm %s4092_s10, %s2373_s23  ;;  %s2946_s24 = scalar_lea.hbm %s4092_s10, 48 }
  0x68   : > { %s2941_s18 = scalar_lea.hbm %s3518_s2, 16  ;;  %p2947_p1 = scmp.lt.u32.totalorder %s3518_s2, %s4092_s10 }
  0x69   : > { %p2942_p6 = scmp.ne.s32.totalorder %s3518_s2, %s2941_s18  ;;  %p2948_p7 = scmp.lt.u32.totalorder %s2946_s24, %s2941_s18 }
  0x6a   : > { %p2950_p10 = scmp.lt.u32.totalorder %s2941_s18, %s3518_s2 }
  0x6b   : > { %p2944_p8 = pnand %p2942_p6, %p3489_p2  ;;  %p2949_p9 = por %p2948_p7, %p2947_p1 }
  0x6d   : > { %p2945_p11 = pneg %p2944_p8  ;;  %p2951_p12 = por %p2950_p10, %p2949_p9 }
  0x6f   : > { %p2952_p0 = pnand %p2951_p12, %p2945_p11 }
  0x71   : > { %2955 = shalt.err (!%p2952_p0)
}
  0x72   : > { %s2956_s23 = scalar_lea.vmem %s680_s28, 16  ;;  %s3257_s20 = smov [#allocation15]  }
  0x73   : > { %p2957_p5 = scmp.ne.s32.totalorder %s680_s28, %s2956_s23  ;;  %s2961_s17 = sshll.u32 %s3257_s20, 4  ;;  %s2962_s17 = int_to_ptr.vmem [resolvable:$false] %s2961_s17 }
  0x74   : > { %s2963_s30 = scalar_lea.vmem %s2962_s17, 32  ;;  %p2964_p6 = scmp.lt.s32.totalorder %s680_s28, %s2962_s17 }
  0x75   : > { %p2959_p3 = pnand %p2957_p5, %p3489_p2  ;;  %p2965_p8 = scmp.lt.s32.totalorder %s2963_s30, %s2956_s23 }
  0x77   : > { %p2960_p4 = pneg %p2959_p3  ;;  %p2966_p13 = por %p2965_p8, %p2964_p6 }
  0x79   : > { %p2967_p1 = pnand %p2966_p13, %p2960_p4 }
  0x7b   : > { %2970 = shalt.err (!%p2967_p1)
}
  0x7c   : > { %p4093_p7 = scmp.ne.s32.totalorder %s4090_s3, 0  ;;  %s3258_s9 = smov [#allocation6]  }
  0x7d   : > { %s571_s18 = sshll.u32 %s3258_s9, 4  ;;  %s4094_s26 = sld [smem:[#allocation32_spill]]  ;;  %s572_s18 = int_to_ptr.vmem [resolvable:$true] %s571_s18 }
  0x7e   : > { %2744 = dma.hbm_to_vmem [thread:$0]  (!%p4093_p7), %s3518_s2, 16, %s680_s28, %s3483_s5  }
  0x7f   : > { %p4096_p9 = scmp.ne.s32.totalorder %s4084_s21, 0 }
  0x83   : > { %s4095_s10 = smov %s4094_s26  ;;  %s2971_s20 = scalar_lea.hbm %s4094_s26, 256 }
  0x84   : > { %p2972_p11 = scmp.ne.s32.totalorder %s4095_s10, %s2971_s20  ;;  %p2978_p12 = scmp.lt.u32.totalorder %s2971_s20, %s4095_s10 }
  0x86   : > { %p2974_p13 = pnand %p2972_p11, %p4096_p9 }
  0x88   : > { %p2975_p10 = pneg %p2974_p13 }
  0x8a   : > { %p2980_p0 = pnand %p2978_p12, %p2975_p10 }
  0x8c   : > { %2983 = shalt.err (!%p2980_p0)
}
  0x8d   : > { %s2984_s2 = scalar_lea.vmem %s572_s18, 256  ;;  %p2992_p6 = scmp.lt.s32.totalorder %s572_s18, %s572_s18 }
  0x8e   : > { %p2985_p5 = scmp.ne.s32.totalorder %s572_s18, %s2984_s2  ;;  %p2993_p8 = scmp.lt.s32.totalorder %s2984_s2, %s2984_s2 }
  0x90   : > { %p2987_p3 = pnand %p2985_p5, %p4096_p9  ;;  %p2994_p1 = por %p2993_p8, %p2992_p6 }
  0x92   : > { %p2988_p4 = pneg %p2987_p3 }
  0x94   : > { %p2995_p7 = pnand %p2994_p1, %p2988_p4 }
  0x96   : > { %2998 = shalt.err (!%p2995_p7)
}
  0x97   : > { %s3259_s14 = smov 64   ;;  %s3260_s15 = smov 4  }
  0x98   : > { %p4097_p11 = scmp.ne.s32.totalorder %s4081_s4, 0  ;;  %s2374_s9 = sshll.u32 %s3467_s16, 6 }
  0x99   : > { %s3261_s1 = smov [#allocation9]   ;;  %s2471_s26 = sshll.u32 %s3251_s27, 10 }
  0x9a   : > { %2725 = dma.hbm_to_vmem [thread:$0]  (!%p4097_p11), %s4095_s10, 256, %s572_s18, [#allocation7], %s3259_s14, %s3259_s14, %s3260_s15  }
  0x9b   : > { %s604_s24 = sshll.u32 %s3261_s1, 4  ;;  %s2999_s17 = scalar_lea.hbm %s4016_s6, 16  ;;  %s605_s24 = int_to_ptr.vmem [resolvable:$true] %s604_s24 }
  0x9c   : > { %p3000_p7 = scmp.ne.s32.totalorder %s4016_s6, %s2999_s17  ;;  %p3006_p12 = scmp.lt.u32.totalorder %s2999_s17, %s4016_s6 }
  0x9e   : > { %p3002_p13 = pnand %p3000_p7, %p4096_p9 }
  0xa0   : > { %p3003_p10 = pneg %p3002_p13 }
  0xa2   : > { %p3008_p0 = pnand %p3006_p12, %p3003_p10 }
  0xa4   : > { %3011 = shalt.err (!%p3008_p0)
}
  0xa5   : > { %s3012_s18 = scalar_lea.vmem %s605_s24, 16  ;;  %s3019_s28 = scalar_lea.vmem %s605_s24, 32 }
  0xa6   : > { %p3013_p5 = scmp.ne.s32.totalorder %s605_s24, %s3012_s18  ;;  %p3020_p6 = scmp.lt.s32.totalorder %s605_s24, %s605_s24 }
  0xa7   : > { %p3021_p8 = scmp.lt.s32.totalorder %s3019_s28, %s3012_s18 }
  0xa8   : > { %p3015_p3 = pnand %p3013_p5, %p4096_p9 }
  0xa9   : > { %p3022_p1 = por %p3021_p8, %p3020_p6 }
  0xaa   : > { %p3016_p4 = pneg %p3015_p3 }
  0xac   : > { %p3023_p2 = pnand %p3022_p1, %p3016_p4 }
  0xae   : > { %3026 = shalt.err (!%p3023_p2)
}
  0xaf   : > { %2731 = dma.hbm_to_vmem [thread:$0]  (!%p4097_p11), %s4016_s6, 16, %s605_s24, [#allocation10]  }
  0xb0   : > { %s3583_s1 = scalar_lea.hbm %s4021_s11, %s2471_s26  ;;  %s690_s20 = scalar_lea.vmem [#allocation16], %s2374_s9 }
  0xb1   : > { %s697_s23 = sshll.u32 %s690_s20, 4  ;;  %s3027_s17 = scalar_lea.hbm %s3583_s1, 1024  ;;  %s3585_s23 = int_to_ptr.vmem [resolvable:$true] %s697_s23 }
  0xb2   : > { %p3028_p2 = scmp.ne.s32.totalorder %s3583_s1, %s3027_s17  ;;  %p4098_p7 = scmp.ne.s32.totalorder %s4091_s22, 0 }
  0xb3   : > { %s3032_s18 = scalar_lea.hbm %s4021_s11, 3072  ;;  %p3033_p12 = scmp.lt.u32.totalorder %s3583_s1, %s4021_s11 }
  0xb4   : > { %p3030_p13 = pnand %p3028_p2, %p4098_p7  ;;  %p3034_p0 = scmp.lt.u32.totalorder %s3032_s18, %s3027_s17 }
  0xb5   : > { %p3036_p3 = scmp.lt.u32.totalorder %s3027_s17, %s3583_s1 }
  0xb6   : > { %p3031_p10 = pneg %p3030_p13  ;;  %p3035_p5 = por %p3034_p0, %p3033_p12 }
  0xb8   : > { %p3037_p4 = por %p3036_p3, %p3035_p5 }
  0xba   : > { %p3038_p6 = pnand %p3037_p4, %p3031_p10 }
  0xbc   : > { %3041 = shalt.err (!%p3038_p6)
}
  0xbd   : > { %s3042_s9 = scalar_lea.vmem %s3585_s23, 1024  ;;  %s3262_s12 = smov [#allocation16]  }
  0xbe   : > { %p3043_p8 = scmp.ne.s32.totalorder %s3585_s23, %s3042_s9  ;;  %s3047_s30 = sshll.u32 %s3262_s12, 4  ;;  %s3048_s30 = int_to_ptr.vmem [resolvable:$false] %s3047_s30 }
  0xbf   : > { %s3049_s19 = scalar_lea.vmem %s3048_s30, 2048  ;;  %p3050_p13 = scmp.lt.s32.totalorder %s3585_s23, %s3048_s30 }
  0xc0   : > { %p3045_p1 = pnand %p3043_p8, %p4098_p7  ;;  %p3051_p11 = scmp.lt.s32.totalorder %s3049_s19, %s3042_s9 }
  0xc2   : > { %p3046_p2 = pneg %p3045_p1  ;;  %p3052_p12 = por %p3051_p11, %p3050_p13 }
  0xc4   : > { %p3053_p0 = pnand %p3052_p12, %p3046_p2 }
  0xc6   : > { %3056 = shalt.err (!%p3053_p0)
}
  0xc7   : > { %p4099_p10 = scmp.ne.s32.totalorder %s4090_s3, 0  ;;  %s3263_s25 = smov [#allocation8]  }
  0xc8   : > { %s590_s20 = sshll.u32 %s3263_s25, 4  ;;  %s3264_s17 = smov [#allocation11]   ;;  %s591_s20 = int_to_ptr.vmem [resolvable:$true] %s590_s20 }
  0xc9   : > { %2747 = dma.hbm_to_vmem [thread:$0]  (!%p4099_p10), %s3583_s1, 1024, %s3585_s23, %s3483_s5, %s3259_s14, %s3259_s14, %s3260_s15  }
  0xca   : > { %s614_s2 = sshll.u32 %s3264_s17, 4  ;;  %s4100_s28 = sld [smem:[#allocation35_spill]]  ;;  %s615_s2 = int_to_ptr.vmem [resolvable:$true] %s614_s2 }
  0xd0   : > { %s3057_s26 = scalar_lea.hbm %s4100_s28, 256 }
  0xd1   : > { %p3058_p11 = scmp.ne.s32.totalorder %s4100_s28, %s3057_s26  ;;  %p3064_p4 = scmp.lt.u32.totalorder %s3057_s26, %s4100_s28 }
  0xd3   : > { %p3060_p5 = pnand %p3058_p11, %p4096_p9 }
  0xd5   : > { %p3061_p3 = pneg %p3060_p5 }
  0xd7   : > { %p3066_p6 = pnand %p3064_p4, %p3061_p3 }
  0xd9   : > { %3069 = shalt.err (!%p3066_p6)
}
  0xda   : > { %s3070_s1 = scalar_lea.vmem %s591_s20, 256  ;;  %p3078_p13 = scmp.lt.s32.totalorder %s591_s20, %s591_s20 }
  0xdb   : > { %p3071_p8 = scmp.ne.s32.totalorder %s591_s20, %s3070_s1  ;;  %p3079_p12 = scmp.lt.s32.totalorder %s3070_s1, %s3070_s1 }
  0xdd   : > { %p3073_p1 = pnand %p3071_p8, %p4096_p9  ;;  %p3080_p0 = por %p3079_p12, %p3078_p13 }
  0xdf   : > { %p3074_p2 = pneg %p3073_p1 }
  0xe1   : > { %p3081_p10 = pnand %p3080_p0, %p3074_p2 }
  0xe3   : > { %3084 = shalt.err (!%p3081_p10)
}
  0xe4   : > { %p4101_p11 = scmp.ne.s32.totalorder %s4081_s4, 0  ;;  %s3085_s18 = scalar_lea.hbm %s4017_s7, 128 }
  0xe5   : > { %p3086_p5 = scmp.ne.s32.totalorder %s4017_s7, %s3085_s18  ;;  %p3092_p4 = scmp.lt.u32.totalorder %s3085_s18, %s4017_s7 }
  0xe6   : > { %2728 = dma.hbm_to_vmem [thread:$0]  (!%p4101_p11), %s4100_s28, 256, %s591_s20, [#allocation7], %s3259_s14, %s3259_s14, %s3260_s15  }
  0xe7   : > { %p3088_p10 = pnand %p3086_p5, %p4096_p9 }
  0xe9   : > { %p3089_p3 = pneg %p3088_p10 }
  0xeb   : > { %p3094_p6 = pnand %p3092_p4, %p3089_p3 }
  0xed   : > { %3097 = shalt.err (!%p3094_p6)
}
  0xee   : > { %s3098_s19 = scalar_lea.vmem %s615_s2, 128  ;;  %p3106_p13 = scmp.lt.s32.totalorder %s615_s2, %s615_s2 }
  0xef   : > { %p3099_p8 = scmp.ne.s32.totalorder %s615_s2, %s3098_s19  ;;  %p3107_p12 = scmp.lt.s32.totalorder %s3098_s19, %s3098_s19 }
  0xf1   : > { %p3101_p1 = pnand %p3099_p8, %p4096_p9  ;;  %p3108_p0 = por %p3107_p12, %p3106_p13 }
  0xf3   : > { %p3102_p2 = pneg %p3101_p1 }
  0xf5   : > { %p3109_p7 = pnand %p3108_p0, %p3102_p2 }
  0xf7   : > { %3112 = shalt.err (!%p3109_p7)
}
  0xf8   : > { %2734 = dma.hbm_to_vmem [thread:$0]  (!%p4101_p11), %s4017_s7, 128, %s615_s2, [#allocation10], %s3259_s14, %s3259_s14, %s3260_s15  }
  0xf9   : > { %s3265_s23 = smov [#allocation12]   ;;  %s2680_s17 = smul.u32 192, %s3467_s16 }
  0xfa   : > { %s628_s25 = sshll.u32 %s3265_s23, 4  ;;  %s2681_s24 = smul.u32 3072, %s3251_s27  ;;  %s629_s25 = int_to_ptr.vmem [resolvable:$true] %s628_s25 }
  0xfb   : > { %s3113_s9 = scalar_lea.hbm %s4018_s8, 16 }
  0xfc   : > { %p3114_p7 = scmp.ne.s32.totalorder %s4018_s8, %s3113_s9  ;;  %p3120_p3 = scmp.lt.u32.totalorder %s3113_s9, %s4018_s8 }
  0xfe   : > { %p3116_p5 = pnand %p3114_p7, %p4096_p9 }
 0x100   : > { %p3117_p10 = pneg %p3116_p5 }
 0x102   : > { %p3122_p4 = pnand %p3120_p3, %p3117_p10 }
 0x104   : > { %3125 = shalt.err (!%p3122_p4)
}
 0x105   : > { %s3126_s16 = scalar_lea.vmem %s629_s25, 16  ;;  %s3133_s27 = scalar_lea.vmem %s629_s25, 32 }
 0x106   : > { %p3127_p6 = scmp.ne.s32.totalorder %s629_s25, %s3126_s16  ;;  %p3134_p2 = scmp.lt.s32.totalorder %s629_s25, %s629_s25 }
 0x107   : > { %p3135_p13 = scmp.lt.s32.totalorder %s3133_s27, %s3126_s16 }
 0x108   : > { %p3129_p8 = pnand %p3127_p6, %p4096_p9 }
 0x109   : > { %p3136_p12 = por %p3135_p13, %p3134_p2 }
 0x10a   : > { %p3130_p1 = pneg %p3129_p8 }
 0x10c   : > { %p3137_p0 = pnand %p3136_p12, %p3130_p1 }
 0x10e   : > { %3140 = shalt.err (!%p3137_p0)
}
 0x10f   : > { %2737 = dma.hbm_to_vmem [thread:$0]  (!%p4101_p11), %s4018_s8, 16, %s629_s25, [#allocation13]  }
 0x110   : > { %s3677_s26 = scalar_lea.hbm %s4023_s13, %s2681_s24  ;;  %s717_s21 = scalar_lea.vmem [#allocation17], %s2680_s17 }
 0x111   : > { %s724_s9 = sshll.u32 %s717_s21, 4  ;;  %s3141_s12 = scalar_lea.hbm %s3677_s26, 3072  ;;  %s3679_s9 = int_to_ptr.vmem [resolvable:$true] %s724_s9 }
 0x112   : > { %p3142_p9 = scmp.ne.s32.totalorder %s3677_s26, %s3141_s12  ;;  %p4102_p7 = scmp.ne.s32.totalorder %s4091_s22, 0 }
 0x113   : > { %s3146_s30 = scalar_lea.hbm %s4023_s13, 9216  ;;  %p3147_p11 = scmp.lt.u32.totalorder %s3677_s26, %s4023_s13 }
 0x114   : > { %p3144_p5 = pnand %p3142_p9, %p4102_p7  ;;  %p3148_p3 = scmp.lt.u32.totalorder %s3146_s30, %s3141_s12 }
 0x115   : > { %p3150_p6 = scmp.lt.u32.totalorder %s3141_s12, %s3677_s26 }
 0x116   : > { %p3145_p10 = pneg %p3144_p5  ;;  %p3149_p4 = por %p3148_p3, %p3147_p11 }
 0x118   : > { %p3151_p8 = por %p3150_p6, %p3149_p4 }
 0x11a   : > { %p3152_p1 = pnand %p3151_p8, %p3145_p10 }
 0x11c   : > { %3155 = shalt.err (!%p3152_p1)
}
 0x11d   : > { %s3156_s17 = scalar_lea.vmem %s3679_s9, 3072  ;;  %s3266_s20 = smov [#allocation17]  }
 0x11e   : > { %p3157_p2 = scmp.ne.s32.totalorder %s3679_s9, %s3156_s17  ;;  %s3161_s16 = sshll.u32 %s3266_s20, 4  ;;  %s3162_s16 = int_to_ptr.vmem [resolvable:$false] %s3161_s16 }
 0x11f   : > { %s3163_s27 = scalar_lea.vmem %s3162_s16, 6144  ;;  %p3164_p0 = scmp.lt.s32.totalorder %s3679_s9, %s3162_s16 }
 0x120   : > { %p3159_p13 = pnand %p3157_p2, %p4102_p7  ;;  %p3165_p9 = scmp.lt.s32.totalorder %s3163_s27, %s3156_s17 }
 0x122   : > { %p3160_p12 = pneg %p3159_p13  ;;  %p3166_p5 = por %p3165_p9, %p3164_p0 }
 0x124   : > { %p3167_p11 = pnand %p3166_p5, %p3160_p12 }
 0x126   : > { %3170 = shalt.err (!%p3167_p11)
}
 0x127   : > { %p4103_p10 = scmp.ne.s32.totalorder %s4090_s3, 0  ;;  %p4104_p7 = scmp.ne.s32.totalorder %s4080_s0, 0 }
 0x128   : > { %p4105_p3 = scmp.eq.s32.totalorder (!%p4104_p7), %s3402_s29, 0 }
 0x129   : > { %2750 = dma.hbm_to_vmem [thread:$0]  (!%p4103_p10), %s3677_s26, 3072, %s3679_s9, %s3483_s5, %s3259_s14, %s3259_s14, %s3260_s15  }
 0x12a   : > { %754 = sbr.rel (%p4104_p7) target bundleno = 2046 (0x7fe), region = 104 }
 0x131   : > { %3214 = dma.done.wait (%p4105_p3), [#allocation4], 512   ;;  %p4106_p4 = pmov %p4105_p3 }
 0x132   : > { %p4107_p6 = pmov %p4105_p3 }
 0x133   : > { %3216 = vsyncadd (%p4106_p4), [#allocation4], 4294966784 }
 0x134   : > { %3218 = dma.done.wait (%p4107_p6), [#allocation7], 512   ;;  %p4108_p8 = pmov %p4105_p3 }
 0x135   : > { %p4109_p1 = pmov %p4105_p3 }
 0x136   : > { %3220 = vsyncadd (%p4108_p8), [#allocation7], 4294966784 }
 0x137   : > { %3222 = dma.done.wait (%p4109_p1), [#allocation10], 144   ;;  %p4110_p2 = pmov %p4109_p1 }
 0x138   : > { %p4111_p13 = pmov %p4109_p1 }
 0x139   : > { %3224 = vsyncadd (%p4110_p2), [#allocation10], 4294967152 }
 0x13a   : > { %3226 = dma.done.wait (%p4111_p13), [#allocation13], 16   ;;  %p4112_p12 = pmov %p4109_p1 }
 0x13b   : > { %s4113_s0 = sld [smem:[#allocation25_spill]]  ;;  %s4114_s5 = sld [smem:[#allocation29_spill]] }
 0x13c   : > { %3228 = vsyncadd (%p4112_p12), [#allocation13], 4294967280  ;;  %s780_s3 = sand.u32 1, %s3402_s29  }
 0x13d   : > { %s781_s15 = scalar_lea.sflag [#allocation4], %s780_s3 }
 0x141   : > { %s3726_s22 = sand.u32 1, %s4113_s0   ;;  %p4115_p0 = scmp.ne.s32.totalorder %s4114_s5, 0 }
 0x142   : > { %s2385_s14 = sshll.u32 %s3726_s22, 2 }
 0x143   : > { %s3729_s2 = scalar_lea.vmem [#allocation14], %s2385_s14 }
 0x144   : > { %3230 = dma.done.wait (%p4115_p0), %s781_s15, 4176  }
 0x145   : > { %3232 = vsyncadd (%p4115_p0), %s781_s15, 4294963120  ;;  %s2386_s1 = sshll.u32 %s3726_s22, 6  ;;  %s2682_s23 = smul.u32 192, %s3726_s22 }
 0x146   : > { %p890_p9 = scmp.lt.s32.totalorder %s3402_s29, 2  ;;  %s4116_s9 = sld [smem:[#allocation38_spill]] }
 0x147   : > { %s4117_s30 = sld [smem:[#allocation39_spill]]  ;;  %s4118_s20 = sld [smem:[#allocation40_spill]] }
 0x148   : > { %s3739_s18 = scalar_select %p890_p9, %s3402_s29, 2 }
 0x149   : > { %s4119_s5 = sld [smem:[#allocation41_spill]]  ;;  %s792_s14 = scalar_lea.vmem [#allocation15], %s3726_s22 }
 0x14a   : > { %s3758_s15 = scalar_lea.vmem [#allocation16], %s2386_s1  ;;  %s3760_s26 = scalar_lea.vmem [#allocation17], %s2682_s23 }
 0x14b   : > { %p4120_p5 = scmp.ne.s32.totalorder %s3402_s29, 0 }
 0x14c   : > { %s892_s12 = scalar_lea.vmem %s4116_s9, %s3739_s18  ;;  %v2812_v0 = vld [vmem:[#allocation11] sm:$0xff] (!%p4120_p5)   ;;  %vm936_vm0 = vcmask (!%p4120_p5), 130048   ;;  %s4121_s4 = sld [smem:[#allocation30_spill]] (!%p4120_p5)  ;;  %v2388_v3 = vld [vmem:[#allocation12] ss:$0 sm:$0xff] (!%p4120_p5)  ;;  %v998_v7 = vld [vmem:[#allocation3 + $0x10] sm:$0xff] (!%p4120_p5) }
 0x14d   : > { %s895_s19 = scalar_lea.vmem %s4117_s30, %s3739_s18  ;;  %s898_s16 = scalar_lea.vmem %s4118_s20, %s3739_s18  ;;  %2555 = vmatprep.subr.bf16.mxu0 (!%p4120_p5), %v2812_v0  ;;  %v996_v11 = vld [vmem:[#allocation3] sm:$0xff] (!%p4120_p5)  ;;  %v999_v15 = vld [vmem:[#allocation3 + $0x18] sm:$0xff] (!%p4120_p5)  ;;  %v997_v19 = vld [vmem:[#allocation3 + $0x8] sm:$0xff] (!%p4120_p5) }
 0x14e   : > { %906 = sbr.rel (%p4120_p5) target bundleno = 562 (0x232), region = 148  ;;  %2556 = vmatpush3.bf16.msra.mxu0 (!%p4120_p5), %v2812_v0 }
 0x14f   : > { %s901_s3 = scalar_lea.vmem %s4119_s5, %s3739_s18 }
 0x152   : > { %v2813_v1 = vld [vmem:[%s4121_s4] sm:$0xff] (!%p4120_p5)   ;;  %v2814_v2 = vld [vmem:[%s4121_s4 + $0x8] sm:$0xff] (!%p4120_p5)  }
 0x153   : > { %2557 = vmatprep.mubr.msk.bf16.mxu0 (!%p4120_p5), %vm936_vm0, %v2813_v1 }
 0x154   : > { %2558 = vmatmul.mubr.msk.bf16.vlgmr.msra.gmra.mrb[0].mxu0 (!%p4120_p5), %vm936_vm0, %v2814_v2 }
 0x227   : > { %v2559_v4 = vpop.f32.mrb[0].mxu0 }
 0x228   : > { %v986_v5 = vadd.f32 %v2559_v4, %v2388_v3  ;;  %v977_v6 = vpop.f32.mrb[1].mxu0 }
 0x229   : > { %v978_v8 = vadd.f32 %v2388_v3, %v977_v6  ;;  %v2560_v9 = vpop.f32.mrb[2].mxu0 }
 0x22a   : > { %v994_v10 = vmax.f32 %v986_v5, 0.0  ;;  %v989_v12 = vadd.f32 %v2560_v9, %v2388_v3  ;;  %v980_v13 = vpop.f32.mrb[3].mxu0 }
 0x22b   : > { %v992_v14 = vmax.f32 %v978_v8, 0.0  ;;  %v981_v16 = vadd.f32 %v2388_v3, %v980_v13 }
 0x22c   : > { %v1002_v17 = vadd.f32 %v998_v7, %v994_v10  ;;  %v995_v18 = vmax.f32 %v989_v12, 0.0 }
 0x22d   : > { %v1000_v20 = vadd.f32 %v996_v11, %v992_v14  ;;  %v993_v21 = vmax.f32 %v981_v16, 0.0 }
 0x22e   : > { %1006 = vst [vmem:[#allocation2 + $0x10] sm:$0xff] %v1002_v17  ;;  %v1003_v22 = vadd.f32 %v999_v15, %v995_v18 }
 0x22f   : > { %1004 = vst [vmem:[#allocation2] sm:$0xff] %v1000_v20  ;;  %v1001_v23 = vadd.f32 %v997_v19, %v993_v21 }
 0x230   : > { %1007 = vst [vmem:[#allocation2 + $0x18] sm:$0xff] %v1003_v22 }
 0x231   : > { %1005 = vst [vmem:[#allocation2 + $0x8] sm:$0xff] %v1001_v23 }
 0x232 PF: > { %v1020_v24 = vld [vmem:[%s3729_s2] sm:$0xf]  ;;  %vm1061_vm1 = vcmask 1043456   ;;  %s4122_s24 = sld [smem:[#allocation34_spill]]  ;;  %vm1048_vm2 = vcmask 64512   ;;  %v2819_v28 = vld [vmem:[%s3758_s15] sm:$0xff]  }
 0x233   : > { %2679 = vmatprep.subr.msk.bf16.mxu0 %vm1061_vm1, %v1020_v24  ;;  %v1063_v26 = vsel %vm1061_vm1, %v1020_v24, 0  ;;  %v2820_v29 = vld [vmem:[%s3758_s15 + $0x8] sm:$0xff]   ;;  %v2821_v30 = vld [vmem:[%s3758_s15 + $0x10] sm:$0xff]   ;;  %v2822_v33 = vld [vmem:[%s3758_s15 + $0x18] sm:$0xff]   ;;  %vm1156_vm3 = vcmask 523264   ;;  %v3267_v45 = vmov 0  }
 0x234   : > { %2562 = vmatpush3.bf16.msra.mxu0 %v1063_v26  ;;  %v2825_v35 = vld [vmem:[%s3758_s15 + $0x20] sm:$0xff]   ;;  %v2826_v38 = vld [vmem:[%s3758_s15 + $0x28] sm:$0xff]   ;;  %v2827_v39 = vld [vmem:[%s3758_s15 + $0x30] sm:$0xff]   ;;  %2815 = vset.pattern.permute.xlu0 %v3267_v45  ;;  %s4123_s9 = sld [smem:[#allocation33_spill]]  ;;  %vm1360_vm4 = vcmask 261120   ;;  %p2447_p11 = scmp.ne.s32.totalorder %s3402_s29, 2 }
 0x235   : > { %2583 = vmatprep.subr.bf16.mxu0 %v2819_v28  ;;  %v2828_v40 = vld [vmem:[%s3758_s15 + $0x38] sm:$0xff]   ;;  %2816 = vset.pattern.permute.xlu1 %v3267_v45  ;;  %v2833_v48 = vld [vmem:[%s3760_s26 + $0x80] sm:$0xff]   ;;  %v2834_v51 = vld [vmem:[%s3760_s26 + $0x88] sm:$0xff]   ;;  %vm3269_vm13 = vmmov (!%p2447_p11), 0   ;;  %s4129_s25 = sld [smem:[#allocation44_spill]] (!%p2447_p11)  ;;  %s4131_s21 = sld [smem:[#allocation43_spill]] (!%p2447_p11) }
 0x236   : > { %v3790_v34 = vld [vmem:[#allocation2] sm:$0xff]  ;;  %v3801_v41 = vld [vmem:[#allocation2 + $0x10] sm:$0xff]  ;;  %v2830_v18 = vld [vmem:[#allocation8 + $0x8] sm:$0xff]   ;;  %s4132_s30 = sld [smem:[#allocation45_spill]] (!%p2447_p11) }
 0x237   : > { %v3803_v42 = vld [vmem:[#allocation2 + $0x18] sm:$0xff]  ;;  %v2829_v44 = vld [vmem:[#allocation8] sm:$0xff]   ;;  %v2835_v52 = vld [vmem:[%s3760_s26 + $0x90] sm:$0xff]  }
 0x238   : > { %v2817_v25 = vld [vmem:[%s4122_s24] sm:$0xff]   ;;  %v2818_v27 = vld [vmem:[%s4122_s24 + $0x8] sm:$0xff]   ;;  %v2823_v31 = vld [vmem:[%s4122_s24 + $0x10] sm:$0xff]   ;;  %v1213_v43 = vpack.c.bf16 %v3803_v42, %v3801_v41  ;;  %2579 = vmatprep.mubr.msk.bf16.mxu1 %vm1156_vm3, %v2829_v44 }
 0x239   : > { %2563 = vmatprep.mubr.msk.bf16.mxu0 %vm1048_vm2, %v2817_v25  ;;  %v2824_v32 = vld [vmem:[%s4122_s24 + $0x18] sm:$0xff]   ;;  %v2394_v53 = vld [vmem:[%s792_s14] ss:$0 sm:$0xff]  ;;  %v2831_v44 = vld [vmem:[#allocation6] sm:$0xff]  }
 0x23a   : > { %2564 = vmatmul.mubr.msk.bf16.vlgmr.msra.gmra.mrb[0].mxu0 %vm1048_vm2, %v2818_v27  ;;  %v3794_v36 = vld [vmem:[#allocation2 + $0x8] sm:$0xff]  ;;  %v1420_v46 = vld [vmem:[%s4123_s9] sm:$0xff]  ;;  %v1422_v47 = vld [vmem:[%s4123_s9 + $0x10] sm:$0xff] }
 0x23b   : > { %2584 = vmatpush3.bf16.msra.mxu0 %v2819_v28  ;;  %2567 = vmatprep.mubr.msk.bf16.mxu0 %vm1048_vm2, %v2823_v31  ;;  %v1212_v37 = vpack.c.bf16 %v3794_v36, %v3790_v34  ;;  %v1421_v49 = vld [vmem:[%s4123_s9 + $0x8] sm:$0xff]  ;;  %v1423_v50 = vld [vmem:[%s4123_s9 + $0x18] sm:$0xff]  ;;  %v2407_v19 = vld [vmem:[%s892_s12] ss:$0 sm:$0xff]  ;;  %s4130_s18 = smov (!%p2447_p11), %s4129_s25 }
 0x23c   : > { %2585 = vmatprep.subr.bf16.mxu0 %v2820_v29  ;;  %1426 = vperm.xlu0 %2815, %v1420_v46   ;;  %v2832_v46 = vld [vmem:[#allocation6 + $0x8] sm:$0xff]  }
 0x23d   : > { %1436 = vperm.xlu1 %2816, %v1422_v47   ;;  %v2836_v47 = vld [vmem:[%s3760_s26 + $0x98] sm:$0xff]  }
 0x23f   : > { %2586 = vmatpush3.bf16.msra.mxu0 %v2820_v29 }
 0x240   : > { %2587 = vmatprep.subr.bf16.mxu0 %v2821_v30  ;;  %1431 = vperm.xlu0 %2815, %v1421_v49   ;;  %v2838_v49 = vld [vmem:[%s3760_s26 + $0x40] sm:$0xff]  }
 0x241   : > { %1441 = vperm.xlu1 %2816, %v1423_v50   ;;  %v2839_v50 = vld [vmem:[%s3760_s26] sm:$0xff]  }
 0x242   : > { %2568 = vmatmul.mubr.msk.bf16.gmra.mrb[4].mxu0 %vm1048_vm2, %v2824_v32 }
 0x243   : > { %2588 = vmatpush3.bf16.msra.mxu0 %v2821_v30  ;;  %2599 = vmatprep.mubr.bf16.mxu0 %v1212_v37 }
 0x244   : > { %2589 = vmatprep.subr.bf16.mxu0 %v2822_v33 }
 0x247   : > { %2590 = vmatpush3.bf16.msra.mxu0 %v2822_v33 }
 0x248   : > { %2591 = vmatprep.subr.bf16.mxu0 %v2825_v35 }
 0x24b   : > { %2592 = vmatpush3.bf16.msra.mxu0 %v2825_v35 }
 0x24c   : > { %2593 = vmatprep.subr.bf16.mxu0 %v2826_v38 }
 0x24f   : > { %2594 = vmatpush3.bf16.msra.mxu0 %v2826_v38 }
 0x250   : > { %2595 = vmatprep.subr.bf16.mxu0 %v2827_v39 }
 0x253   : > { %2596 = vmatpush3.bf16.msra.mxu0 %v2827_v39 }
 0x254   : > { %2597 = vmatprep.subr.bf16.mxu0 %v2828_v40 }
 0x257   : > { %2598 = vmatpush3.bf16.msra.mxu0 %v2828_v40 }
 0x258   : > { %2603 = vmatprep.subr.bf16.mxu0 %v2833_v48 }
 0x25a   : > { %2600 = vmatmul.mubr.bf16.vlgmr.msra.gmra.mrb[8].mxu0 %v1213_v43 }
 0x25b   : > { %2604 = vmatpush3.bf16.msra.mxu0 %v2833_v48  ;;  %v2837_v48 = vld [vmem:[%s3760_s26 + $0xa0] sm:$0xff]  }
 0x25c   : > { %2605 = vmatprep.subr.bf16.mxu0 %v2834_v51 }
 0x25f   : > { %2606 = vmatpush3.bf16.msra.mxu0 %v2834_v51  ;;  %v2840_v51 = vld [vmem:[%s3760_s26 + $0xa8] sm:$0xff]  }
 0x260   : > { %2607 = vmatprep.subr.bf16.mxu0 %v2835_v52 }
 0x263   : > { %2608 = vmatpush3.bf16.msra.mxu0 %v2835_v52  ;;  %v2842_v52 = vld [vmem:[%s3760_s26 + $0x8] sm:$0xff]  }
 0x264   : > { %2609 = vmatprep.subr.bf16.mxu0 %v2836_v47 }
 0x267   : > { %2610 = vmatpush3.bf16.msra.mxu0 %v2836_v47 }
 0x268   : > { %2611 = vmatprep.subr.bf16.mxu0 %v2837_v48 }
 0x26b   : > { %2612 = vmatpush3.bf16.msra.mxu0 %v2837_v48 }
 0x26c   : > { %2613 = vmatprep.subr.bf16.mxu0 %v2840_v51 }
 0x26f   : > { %2614 = vmatpush3.bf16.msra.mxu0 %v2840_v51 }
 0x30d   : > { %v2565_v54 = vpop.f32.mrb[0].mxu0 }
 0x30e   : > { %v1108_v55 = vadd.f32 %v2565_v54, %v2394_v53  ;;  %v1099_v56 = vpop.f32.mrb[1].mxu0  ;;  %v2844_v54 = vld [vmem:[%s3760_s26 + $0x50] sm:$0xff]  }
 0x30f   : > { %v1100_v57 = vadd.f32 %v2394_v53, %v1099_v56  ;;  %v2566_v58 = vpop.f32.mrb[2].mxu0  ;;  %v2846_v56 = vld [vmem:[%s3760_s26 + $0xb8] sm:$0xff]  }
 0x310   : > { %v1132_v59 = vmax.f32 %v1108_v55, 0.0  ;;  %v1111_v60 = vadd.f32 %v2566_v58, %v2394_v53  ;;  %v1102_v61 = vpop.f32.mrb[3].mxu0  ;;  %v2845_v55 = vld [vmem:[%s3760_s26 + $0x10] sm:$0xff]   ;;  %v2848_v58 = vld [vmem:[%s3760_s26 + $0x18] sm:$0xff]  }
 0x311   : > { %v1103_v62 = vadd.f32 %v2394_v53, %v1102_v61  ;;  %v1130_v0 = vmax.f32 %v1100_v57, 0.0  ;;  %v2847_v57 = vld [vmem:[%s3760_s26 + $0x58] sm:$0xff]   ;;  %v2851_v61 = vld [vmem:[%s3760_s26 + $0x68] sm:$0xff]  }
 0x312   : > { %v1133_v63 = vmax.f32 %v1111_v60, 0.0  ;;  %v2850_v60 = vld [vmem:[%s3760_s26 + $0x20] sm:$0xff]  }
 0x313   : > { %v1131_v1 = vmax.f32 %v1103_v62, 0.0  ;;  %v2852_v62 = vld [vmem:[%s3760_s26 + $0x28] sm:$0xff]  }
 0x314   : > { %v1143_v2 = vpack.c.bf16 %v1133_v63, %v1132_v59  ;;  %v2849_v59 = vld [vmem:[%s3760_s26 + $0x60] sm:$0xff]   ;;  %v2853_v63 = vld [vmem:[%s3760_s26 + $0x70] sm:$0xff]  }
 0x315   : > { %v1142_v3 = vpack.c.bf16 %v1131_v1, %v1130_v0  ;;  %v2569_v4 = vpop.f32.mrb[4].mxu0  ;;  %v2854_v0 = vld [vmem:[%s3760_s26 + $0x30] sm:$0xff]   ;;  %v2855_v1 = vld [vmem:[%s3760_s26 + $0x78] sm:$0xff]  }
 0x316   : > { %v1124_v5 = vadd.f32 %v2569_v4, %v2394_v53  ;;  %v1115_v6 = vpop.f32.mrb[5].mxu0 }
 0x317   : > { %2571 = vmatprep.subr.bf16.mxu1 %v1142_v3  ;;  %v1116_v7 = vadd.f32 %v2394_v53, %v1115_v6  ;;  %v2570_v8 = vpop.f32.mrb[6].mxu0 }
 0x318   : > { %2572 = vmatpush3.bf16.msra.mxu1 %v1142_v3  ;;  %v1136_v9 = vmax.f32 %v1124_v5, 0.0  ;;  %v1127_v10 = vadd.f32 %v2570_v8, %v2394_v53  ;;  %v1118_v11 = vpop.f32.mrb[7].mxu0 }
 0x319   : > { %2573 = vmatprep.subr.bf16.mxu1 %v1143_v2  ;;  %v1134_v12 = vmax.f32 %v1116_v7, 0.0  ;;  %v1119_v13 = vadd.f32 %v2394_v53, %v1118_v11  ;;  %v2843_v53 = vld [vmem:[%s3760_s26 + $0xb0] sm:$0xff]   ;;  %v1427_v7 = vpop.permute.xlu0 %1426 }
 0x31a   : > { %v1137_v14 = vmax.f32 %v1127_v10, 0.0  ;;  %2615 = vmatprep.subr.bf16.mxu0 %v2843_v53 }
 0x31b   : > { %v1135_v15 = vmax.f32 %v1119_v13, 0.0  ;;  %2616 = vmatpush3.bf16.msra.mxu0 %v2843_v53 }
 0x31c   : > { %2574 = vmatpush3.bf16.msra.mxu1 %v1143_v2  ;;  %v1145_v16 = vpack.c.bf16 %v1137_v14, %v1136_v9  ;;  %2617 = vmatprep.subr.bf16.mxu0 %v2846_v56  ;;  %v2856_v2 = vld [vmem:[%s3760_s26 + $0x38] sm:$0xff]  }
 0x31d   : > { %v1144_v17 = vpack.c.bf16 %v1135_v15, %v1134_v12  ;;  %v1432_v11 = vpop.permute.xlu0 %1431 }
 0x31f   : > { %2575 = vmatprep.subr.bf16.mxu1 %v1144_v17  ;;  %2618 = vmatpush3.bf16.msra.mxu0 %v2846_v56 }
 0x320   : > { %2576 = vmatpush3.bf16.msra.mxu1 %v1144_v17 }
 0x321   : > { %2577 = vmatprep.subr.bf16.mxu1 %v1145_v16 }
 0x324   : > { %2578 = vmatpush3.bf16.msra.mxu1 %v1145_v16 }
 0x327   : > { %2580 = vmatmul.mubr.msk.bf16.vlgmr.msra.gmra.mrb[0].mxu1 %vm1156_vm3, %v2830_v18  ;;  %v1437_v18 = vpop.permute.xlu1 %1436 }
 0x328   : > { %1399 = vmatprep.mubr.bf16.mxu1 %v3267_v45 }
 0x32d   : > { %v2601_v20 = vpop.f32.mrb[8].mxu0 }
 0x32e   : > { %v1328_v21 = vadd.f32 %v2601_v20, %v2407_v19  ;;  %v1319_v22 = vpop.f32.mrb[9].mxu0 }
 0x32f   : > { %v1320_v23 = vadd.f32 %v2407_v19, %v1319_v22  ;;  %v2602_v24 = vpop.f32.mrb[10].mxu0 }
 0x330   : > { %v1336_v25 = vmax.f32 %v1328_v21, 0.0  ;;  %v1331_v26 = vadd.f32 %v2602_v24, %v2407_v19  ;;  %v1322_v27 = vpop.f32.mrb[11].mxu0 }
 0x331   : > { %v1334_v28 = vmax.f32 %v1320_v23, 0.0  ;;  %v1323_v29 = vadd.f32 %v2407_v19, %v1322_v27 }
 0x332   : > { %v1337_v30 = vmax.f32 %v1331_v26, 0.0  ;;  %v1340_v32 = vmul.f32 %v1336_v25, %v1336_v25 }
 0x333   : > { %v1335_v31 = vmax.f32 %v1323_v29, 0.0  ;;  %v1338_v37 = vmul.f32 %v1334_v28, %v1334_v28 }
 0x334   : > { %v1341_v33 = vmul.f32 %v1337_v30, %v1337_v30  ;;  %v1344_v35 = vpack.c.bf16 %v1337_v30, %v1336_v25  ;;  %v1442_v30 = vpop.permute.xlu1 %1441 }
 0x335   : > { %v1339_v38 = vmul.f32 %v1335_v31, %v1335_v31  ;;  %v1342_v39 = vpack.c.bf16 %v1335_v31, %v1334_v28 }
 0x336   : > { %v1345_v40 = vpack.c.bf16 %v1341_v33, %v1340_v32 }
 0x337   : > { %v1343_v43 = vpack.c.bf16 %v1339_v38, %v1338_v37 }
 0x339   : > { %1367 = vmatprep.subr.bf16.mxu1 %v1343_v43 }
 0x33a   : > { %1368 = vmatpush1.bf16.msra.mxu1 %v1342_v39 }
 0x33b   : > { %1369 = vmatprep.subr.bf16.mxu1 %v1345_v40 }
 0x33e   : > { %1370 = vmatpush1.bf16.msra.mxu1 %v1344_v35 }
 0x33f   : > { %2496 = vmatprep.subr.bf16.mxu1 %v2838_v49 }
 0x341   : > { %2418 = vmatmul.mubr.msk.bf16.vlgmr.msra.gmra.mrb[4].mxu1 %vm1360_vm4, %v2831_v44 }
 0x342   : > { %1409 = vmatprep.mubr.bf16.mxu1 %v3267_v45  ;;  %2497 = vmatpush3.bf16.msra.mxu1 %v2839_v50  ;;  %v2841_v45 = vld [vmem:[%s3760_s26 + $0x48] sm:$0xff]  }
 0x343   : > { %2498 = vmatprep.subr.bf16.mxu1 %v2841_v45 }
 0x346   : > { %2499 = vmatpush3.bf16.msra.mxu1 %v2842_v52 }
 0x347   : > { %2500 = vmatprep.subr.bf16.mxu1 %v2844_v54 }
 0x349   : > { %2419 = vmatmul.mubr.msk.bf16.gmra.mrb[8].mxu1 %vm1360_vm4, %v2832_v46 }
 0x34a   : > { %2501 = vmatpush3.bf16.msra.mxu1 %v2845_v55 }
 0x34b   : > { %2502 = vmatprep.subr.bf16.mxu1 %v2847_v57 }
 0x34e   : > { %2503 = vmatpush3.bf16.msra.mxu1 %v2848_v58 }
 0x34f   : > { %2504 = vmatprep.subr.bf16.mxu1 %v2849_v59 }
 0x352   : > { %2505 = vmatpush3.bf16.msra.mxu1 %v2850_v60 }
 0x353   : > { %2506 = vmatprep.subr.bf16.mxu1 %v2851_v61 }
 0x356   : > { %2507 = vmatpush3.bf16.msra.mxu1 %v2852_v62 }
 0x357   : > { %2508 = vmatprep.subr.bf16.mxu1 %v2853_v63 }
 0x35a   : > { %2509 = vmatpush3.bf16.msra.mxu1 %v2854_v0 }
 0x35b   : > { %2510 = vmatprep.subr.bf16.mxu1 %v2855_v1 }
 0x35e   : > { %2511 = vmatpush3.bf16.msra.mxu1 %v2856_v2 }
 0x3fa   : > { %v3858_v3 = vpop.f32.mrb[0].mxu1 }
 0x3fb   : > { %v3860_v4 = vpop.f32.mrb[1].mxu1 }
 0x3fc   : > { %v3862_v5 = vpop.f32.mrb[2].mxu1 }
 0x3fd   : > { %v3864_v6 = vpop.f32.mrb[3].mxu1 }
 0x414   : > { %v1401_v8 = vpop.f32.mrb[4].mxu1 }
 0x415   : > { %v3866_v9 = vmul.f32 %v1427_v7, %v1401_v8  ;;  %v1403_v10 = vpop.f32.mrb[5].mxu1 }
 0x416   : > { %v1448_v12 = vmul.f32 %v1427_v7, %v1403_v10  ;;  %v1405_v13 = vpop.f32.mrb[6].mxu1 }
 0x417   : > { %v1452_v14 = vmul.f32 %v3866_v9, %v3866_v9  ;;  %v1445_v15 = vmul.f32 %v1432_v11, %v1405_v13  ;;  %v1498_v16 = vpack.c.bf16 %v1405_v13, %v1401_v8  ;;  %v1407_v17 = vpop.f32.mrb[7].mxu1 }
 0x418   : > { %v1449_v19 = vmul.f32 %v1432_v11, %v1407_v17 }
 0x419   : > { %v1456_v20 = vsub.f32 %v1448_v12, %v1452_v14  ;;  %v1453_v21 = vmul.f32 %v1445_v15, %v1445_v15  ;;  %v1496_v22 = vpack.c.bf16 %v1445_v15, %v3866_v9  ;;  %2619 = vmatprep.mubr.bf16.mxu0 %v1498_v16 }
 0x41b   : > { %v1460_v23 = vmax.f32 %v1456_v20, 0.0  ;;  %v1457_v24 = vsub.f32 %v1449_v19, %v1453_v21 }
 0x41c   : > { %v1411_v25 = vpop.f32.mrb[8].mxu1 }
 0x41d   : > { %v1464_v26 = vadd.f32 1e-05, %v1460_v23  ;;  %v1461_v27 = vmax.f32 %v1457_v24, 0.0  ;;  %v1446_v28 = vmul.f32 %v1437_v18, %v1411_v25  ;;  %v1413_v29 = vpop.f32.mrb[9].mxu1 }
 0x41e   : > { %v1450_v31 = vmul.f32 %v1437_v18, %v1413_v29  ;;  %v1415_v32 = vpop.f32.mrb[10].mxu1  ;;  %v2420_v18 = vld [vmem:[%s895_s19] ss:$0 sm:$0xff] }
 0x41f   : > { %2857 = vrsqrt.f32 %v1464_v26  ;;  %v1465_v33 = vadd.f32 1e-05, %v1461_v27  ;;  %v1454_v35 = vmul.f32 %v1446_v28, %v1446_v28  ;;  %v1447_v37 = vmul.f32 %v1442_v30, %v1415_v32  ;;  %v1417_v38 = vpop.f32.mrb[11].mxu1 }
 0x420   : > { %v1501_v39 = vpack.c.bf16 %v1415_v32, %v1411_v25  ;;  %v1451_v40 = vmul.f32 %v1442_v30, %v1417_v38  ;;  %vm1470_vm5 = vcmp.eq.f32.partialorder %v1464_v26, inf  ;;  %v1473_v56 = vand.u32 2147483648, %v1464_v26 }
 0x421   : > { %2859 = vrsqrt.f32 %v1465_v33  ;;  %v1458_v43 = vsub.f32 %v1450_v31, %v1454_v35  ;;  %v1455_v44 = vmul.f32 %v1447_v37, %v1447_v37  ;;  %v1499_v46 = vpack.c.bf16 %v1447_v37, %v1446_v28 }
 0x422   : > { %2620 = vmatmul.mubr.bf16.vlgmr.msra.gmra.mrb[12].mxu0 %v1501_v39  ;;  %vm1477_vm6 = vcmp.eq.f32.partialorder %v1465_v33, inf  ;;  %v1480_v57 = vand.u32 2147483648, %v1465_v33  ;;  %vm1472_vm7 = vcmp.eq.f32.partialorder %v1464_v26, 0.0  ;;  %vm1479_vm8 = vcmp.eq.f32.partialorder %v1465_v33, 0.0 }
 0x423   : > { %v1462_v47 = vmax.f32 %v1458_v43, 0.0  ;;  %v1459_v48 = vsub.f32 %v1451_v40, %v1455_v44 }
 0x425   : > { %v1466_v49 = vadd.f32 1e-05, %v1462_v47  ;;  %v1463_v50 = vmax.f32 %v1459_v48, 0.0 }
 0x427   : > { %2861 = vrsqrt.f32 %v1466_v49  ;;  %v1467_v51 = vadd.f32 1e-05, %v1463_v50  ;;  %vm1484_vm9 = vcmp.eq.f32.partialorder %v1466_v49, inf  ;;  %v1487_v7 = vand.u32 2147483648, %v1466_v49 }
 0x428   : > { %vm1486_vm11 = vcmp.eq.f32.partialorder %v1466_v49, 0.0 }
 0x429   : > { %v2858_v45 = vpop.eup %2857  ;;  %2863 = vrsqrt.f32 %v1467_v51  ;;  %vm1491_vm10 = vcmp.eq.f32.partialorder %v1467_v51, inf  ;;  %v1494_v8 = vand.u32 2147483648, %v1467_v51  ;;  %vm1493_vm12 = vcmp.eq.f32.partialorder %v1467_v51, 0.0 }
 0x42a   : > { %v1469_v52 = vmul.f32 %v2858_v45, %v1464_v26 }
 0x42b   : > { %v2860_v53 = vpop.eup %2859 }
 0x42c   : > { %v1471_v54 = vsel %vm1470_vm5, %v1464_v26, %v1469_v52  ;;  %v1476_v55 = vmul.f32 %v2860_v53, %v1465_v33 }
 0x42d   : > { %v1474_v59 = vsel %vm1472_vm7, %v1473_v56, %v1471_v54 }
 0x42e   : > { %v1478_v58 = vsel %vm1477_vm6, %v1465_v33, %v1476_v55 }
 0x42f   : > { %v1481_v60 = vsel %vm1479_vm8, %v1480_v57, %v1478_v58 }
 0x430   : > { %v1497_v61 = vpack.c.bf16 %v1481_v60, %v1474_v59 }
 0x431   : > { %v2862_v62 = vpop.eup %2861 }
 0x432   : > { %1733 = vmatprep.mubr.bf16.mxu1 %v1497_v61  ;;  %v1483_v63 = vmul.f32 %v2862_v62, %v1466_v49 }
 0x433   : > { %v2864_v0 = vpop.eup %2863  ;;  %1734 = vmatmul.mubr.bf16.vlgmr.msra.gmra.mrb[12].mxu1 %v1496_v22 }
 0x434   : > { %v1485_v1 = vsel %vm1484_vm9, %v1466_v49, %v1483_v63  ;;  %v1490_v2 = vmul.f32 %v2864_v0, %v1467_v51 }
 0x435   : > { %v1488_v10 = vsel %vm1486_vm11, %v1487_v7, %v1485_v1 }
 0x436   : > { %v1492_v9 = vsel %vm1491_vm10, %v1467_v51, %v1490_v2 }
 0x437   : > { %v1495_v11 = vsel %vm1493_vm12, %v1494_v8, %v1492_v9 }
 0x438   : > { %v1500_v12 = vpack.c.bf16 %v1495_v11, %v1488_v10 }
 0x43a   : > { %1741 = vmatprep.mubr.bf16.mxu1 %v1500_v12 }
 0x43b   : > { %1742 = vmatmul.mubr.bf16.gmra.mrb[16].mxu1 %v1499_v46 }
 0x4f5   : > { %v2621_v13 = vpop.f32.mrb[12].mxu0 }
 0x4f6   : > { %v1784_v14 = vpop.f32.mrb[13].mxu0 }
 0x4f7   : > { %v2622_v15 = vpop.f32.mrb[14].mxu0 }
 0x4f8   : > { %v1787_v16 = vpop.f32.mrb[15].mxu0 }
 0x506   : > { %v2512_v17 = vpop.f32.mrb[12].mxu1 }
 0x507   : > { %v2513_v19 = vpop.f32.mrb[13].mxu1 }
 0x508   : > { %v2514_v20 = vadd.f32 %v2513_v19, %v2512_v17  ;;  %v2515_v21 = vpop.f32.mrb[14].mxu1 }
 0x509   : > { %v2516_v22 = vpop.f32.mrb[15].mxu1 }
 0x50a   : > { %v1736_v23 = vadd.f32 %v2514_v20, %v2420_v18  ;;  %v2517_v24 = vadd.f32 %v2516_v22, %v2515_v21  ;;  %v2446_v20 = vld [vmem:[%s901_s3] ss:$0 sm:$0xff]  ;;  %s4128_s3 = sld [smem:[#allocation42_spill]] (!%p2447_p11) }
 0x50c   : > { %v2673_v25 = vadd.f32 %v1736_v23, %v3860_v4  ;;  %v1739_v26 = vadd.f32 %v2517_v24, %v2420_v18 }
 0x50e   : > { %v2674_v27 = vadd.f32 %v2673_v25, %v1784_v14  ;;  %v2677_v28 = vadd.f32 %v1739_v26, %v3864_v6  ;;  %v2518_v29 = vpop.f32.mrb[16].mxu1 }
 0x50f   : > { %v2519_v30 = vpop.f32.mrb[17].mxu1 }
 0x510   : > { %v2678_v31 = vadd.f32 %v2677_v28, %v1787_v16  ;;  %v2520_v32 = vadd.f32 %v2519_v30, %v2518_v29  ;;  %v2521_v33 = vpop.f32.mrb[18].mxu1  ;;  %v1814_v35 = vmul.f32 %v2674_v27, %v2674_v27 }
 0x511   : > { %v2522_v37 = vpop.f32.mrb[19].mxu1 }
 0x512   : > { %v1803_v38 = vadd.f32 %v2678_v31, %v2674_v27  ;;  %v1815_v39 = vmul.f32 %v2678_v31, %v2678_v31  ;;  %v1744_v40 = vadd.f32 %v2520_v32, %v2420_v18  ;;  %v2523_v43 = vadd.f32 %v2522_v37, %v2521_v33 }
 0x514   : > { %v1818_v44 = vadd.f32 %v1815_v39, %v1814_v35  ;;  %v2671_v46 = vadd.f32 %v3858_v3, %v1744_v40  ;;  %v1747_v47 = vadd.f32 %v2523_v43, %v2420_v18 }
 0x516   : > { %v2672_v4 = vadd.f32 %v2671_v46, %v2621_v13  ;;  %v2675_v48 = vadd.f32 %v3862_v5, %v1747_v47  ;;  %v1879_v47 = vld [vmem:[#allocation9] sm:$0x1] (!%p2447_p11) }
 0x518   : > { %v1804_v49 = vadd.f32 %v2672_v4, %v1803_v38  ;;  %v1816_v6 = vmul.f32 %v2672_v4, %v2672_v4  ;;  %v2676_v50 = vadd.f32 %v2675_v48, %v2622_v15  ;;  %v2445_v15 = vld [vmem:[%s898_s16] ss:$0 sm:$0xff]  ;;  %v2870_v48 = vld [vmem:[%s4128_s3 + $0x18] sm:$0xff] (!%p2447_p11)  }
 0x51a   : > { %v1819_v51 = vadd.f32 %v1818_v44, %v1816_v6  ;;  %v1805_v45 = vadd.f32 %v2676_v50, %v1804_v49  ;;  %v1817_v52 = vmul.f32 %v2676_v50, %v2676_v50  ;;  %v3268_v44 = vmov (!%p2447_p11), 0.0   ;;  %v2871_v49 = vld [vmem:[%s4128_s3 + $0x20] sm:$0xff] (!%p2447_p11)   ;;  %v2872_v6 = vld [vmem:[%s4128_s3 + $0x28] sm:$0xff] (!%p2447_p11)  }
 0x51b   : > { %2623 = vmatprep.subr.bf16.mxu0 (!%p2447_p11), %v3268_v44  ;;  %2627 = vmatprep.mubr.msk.bf16.mxu0 (!%p2447_p11), %vm3269_vm13, %v3268_v44 }
 0x51c   : > { %v1806_v53 = vrot.slane %v1805_v45, 4  ;;  %v1820_v54 = vadd.f32 %v1819_v51, %v1817_v52  ;;  %2631 = vmatprep.subr.bf16.mxu1 (!%p2447_p11), %v3268_v44  ;;  %2647 = vmatprep.mubr.msk.bf16.mxu1 (!%p2447_p11), %vm3269_vm13, %v3268_v44  ;;  %v2874_v51 = vld [vmem:[%s4128_s3 + $0x38] sm:$0xff] (!%p2447_p11)   ;;  %v2876_v52 = vld [vmem:[%s4130_s18 + $0x8] sm:$0xff] (!%p2447_p11)  }
 0x51e   : > { %v1807_v55 = vadd.f32 %v1806_v53, %v1805_v45  ;;  %v1821_v56 = vrot.slane %v1820_v54, 4  ;;  %v2875_v45 = vld [vmem:[%s4129_s25] sm:$0xff] (!%p2447_p11)   ;;  %v2877_v53 = vld [vmem:[%s4130_s18 + $0x10] sm:$0xff] (!%p2447_p11)  }
 0x520   : > { %v1808_v57 = vrot.slane %v1807_v55, 2  ;;  %v1822_v58 = vadd.f32 %v1821_v56, %v1820_v54  ;;  %v2878_v54 = vld [vmem:[%s4130_s18 + $0x18] sm:$0xff] (!%p2447_p11)   ;;  %v2880_v56 = vld [vmem:[%s4130_s18 + $0x28] sm:$0xff] (!%p2447_p11)  }
 0x522   : > { %v1809_v59 = vadd.f32 %v1808_v57, %v1807_v55  ;;  %v1823_v60 = vrot.slane %v1822_v58, 2  ;;  %v2879_v55 = vld [vmem:[%s4130_s18 + $0x20] sm:$0xff] (!%p2447_p11)  }
 0x524   : > { %v1810_v61 = vrot.slane %v1809_v59, 1  ;;  %v1824_v3 = vadd.f32 %v1823_v60, %v1822_v58 }
 0x526   : > { %v1811_v62 = vadd.f32 %v1810_v61, %v1809_v59  ;;  %v1825_v63 = vrot.slane %v1824_v3, 1 }
 0x528   : > { %v1813_v5 = vmul.f32 0.03125, %v1811_v62  ;;  %v1826_v0 = vadd.f32 %v1825_v63, %v1824_v3  ;;  %v2881_v3 = vld [vmem:[%s4130_s18 + $0x30] sm:$0xff] (!%p2447_p11)   ;;  %v2882_v62 = vld [vmem:[%s4130_s18 + $0x38] sm:$0xff] (!%p2447_p11)   ;;  %v2449_v63 = vld [vmem:[%s4131_s21] ss:$0 sm:$0xff] (!%p2447_p11) }
 0x52a   : > { %v1827_v1 = vmul.f32 0.03125, %v1826_v0  ;;  %v1828_v2 = vmul.f32 %v1813_v5, %v1813_v5  ;;  %v1831_v7 = vsub.f32 %v2674_v27, %v1813_v5  ;;  %v1832_v8 = vsub.f32 %v2678_v31, %v1813_v5 }
 0x52b   : > { %v1833_v9 = vsub.f32 %v2672_v4, %v1813_v5  ;;  %v1834_v10 = vsub.f32 %v2676_v50, %v1813_v5  ;;  %v2869_v4 = vld [vmem:[%s4128_s3 + $0x10] sm:$0xff] (!%p2447_p11)  }
 0x52c   : > { %v1829_v11 = vsub.f32 %v1827_v1, %v1828_v2  ;;  %v2873_v50 = vld [vmem:[%s4128_s3 + $0x30] sm:$0xff] (!%p2447_p11)  }
 0x52e   : > { %v1830_v12 = vmax.f32 %v1829_v11, 0.0 }
 0x530   : > { %v1835_v13 = vadd.f32 1e-05, %v1830_v12 }
 0x532   : > { %2865 = vrsqrt.f32 %v1835_v13 }
 0x53c   : > { %v2866_v14 = vpop.eup %2865 }
 0x53d   : > { %v1837_v16 = vmul.f32 %v2866_v14, %v1831_v7  ;;  %v1838_v17 = vmul.f32 %v2866_v14, %v1832_v8  ;;  %v1839_v18 = vmul.f32 %v2866_v14, %v1833_v9  ;;  %v1840_v19 = vmul.f32 %v2866_v14, %v1834_v10  ;;  %v2458_v10 = vld [vmem:[%s4132_s30] ss:$0 sm:$0xff] (!%p2447_p11) }
 0x53f   : > { %v1848_v21 = vmul.f32 %v2445_v15, %v1837_v16  ;;  %v1849_v22 = vmul.f32 %v2445_v15, %v1838_v17  ;;  %v1850_v23 = vmul.f32 %v2445_v15, %v1839_v18  ;;  %v1851_v24 = vmul.f32 %v2445_v15, %v1840_v19 }
 0x541   : > { %v1859_v25 = vadd.f32 %v2446_v20, %v1848_v21  ;;  %v1860_v26 = vadd.f32 %v2446_v20, %v1849_v22  ;;  %v1861_v27 = vadd.f32 %v2446_v20, %v1850_v23  ;;  %v1862_v28 = vadd.f32 %v2446_v20, %v1851_v24 }
 0x542   : > { %1878 = sbr.rel (%p2447_p11) target bundleno = 2015 (0x7df), region = 152 }
 0x543   : > { %v1863_v29 = vmax.f32 %v1859_v25, 0.0  ;;  %v1864_v30 = vmax.f32 %v1860_v26, 0.0  ;;  %v1865_v31 = vmax.f32 %v1861_v27, 0.0  ;;  %v1866_v32 = vmax.f32 %v1862_v28, 0.0 }
 0x545   : > { %v1867_v33 = vadd.f32 %v1863_v29, %v3790_v34  ;;  %v1868_v35 = vadd.f32 %v1864_v30, %v3794_v36  ;;  %v1869_v37 = vadd.f32 %v1865_v31, %v3801_v41  ;;  %v1870_v38 = vadd.f32 %v1866_v32, %v3803_v42  ;;  %v2867_v36 = vld [vmem:[%s4128_s3] sm:$0xff] (!%p2447_p11)   ;;  %v2868_v42 = vld [vmem:[%s4128_s3 + $0x8] sm:$0xff] (!%p2447_p11)  }
 0x546   : > { %2632 = vmatpush3.bf16.msra.mxu1 (!%p2447_p11), %v2867_v36 }
 0x547   : > { %1871 = vst [vmem:[#allocation2] sm:$0xff] %v1867_v33  ;;  %1872 = vst [vmem:[#allocation2 + $0x8] sm:$0xff] %v1868_v35  ;;  %2633 = vmatprep.subr.bf16.mxu1 (!%p2447_p11), %v3268_v44 }
 0x548   : > { %1873 = vst [vmem:[#allocation2 + $0x10] sm:$0xff] %v1869_v37  ;;  %1874 = vst [vmem:[#allocation2 + $0x18] sm:$0xff] %v1870_v38 }
 0x54a   : > { %2634 = vmatpush3.bf16.msra.mxu1 %v2868_v42 }
 0x54b   : > { %2635 = vmatprep.subr.bf16.mxu1 %v3268_v44 }
 0x54e   : > { %v1880_v39 = vld [vmem:[#allocation2] sm:$0xff]  ;;  %v1881_v40 = vld [vmem:[#allocation2 + $0x8] sm:$0xff]  ;;  %2636 = vmatpush3.bf16.msra.mxu1 %v2869_v4 }
 0x54f   : > { %v1882_v43 = vld [vmem:[#allocation2 + $0x10] sm:$0xff]  ;;  %v1884_v34 = vpack.c.bf16 %v1881_v40, %v1880_v39  ;;  %v1883_v46 = vld [vmem:[#allocation2 + $0x18] sm:$0xff]  ;;  %2637 = vmatprep.subr.bf16.mxu1 %v3268_v44 }
 0x550   : > { %v1885_v41 = vpack.c.bf16 %v1883_v46, %v1882_v43 }
 0x551   : > { %2624 = vmatpush3.bf16.msra.mxu0 %v1884_v34 }
 0x552   : > { %2625 = vmatprep.subr.bf16.mxu0 %v3268_v44  ;;  %2638 = vmatpush3.bf16.msra.mxu1 %v2870_v48 }
 0x553   : > { %2639 = vmatprep.subr.bf16.mxu1 %v3268_v44 }
 0x555   : > { %2626 = vmatpush3.bf16.msra.mxu0 %v1885_v41 }
 0x556   : > { %2651 = vmatprep.subr.bf16.mxu0 %v3268_v44  ;;  %2640 = vmatpush3.bf16.msra.mxu1 %v2871_v49 }
 0x557   : > { %2641 = vmatprep.subr.bf16.mxu1 %v3268_v44 }
 0x558   : > { %2628 = vmatmul.mubr.msk.bf16.vlgmr.msra.gmra.mrb[0].mxu0 %vm1360_vm4, %v1879_v47 }
 0x559   : > { %2667 = vmatprep.mubr.msk.bf16.mxu0 %vm3269_vm13, %v3268_v44  ;;  %2652 = vmatpush3.bf16.msra.mxu0 %v2875_v45 }
 0x55a   : > { %2642 = vmatpush3.bf16.msra.mxu1 %v2872_v6  ;;  %2653 = vmatprep.subr.bf16.mxu0 %v3268_v44 }
 0x55b   : > { %2643 = vmatprep.subr.bf16.mxu1 %v3268_v44 }
 0x55d   : > { %2654 = vmatpush3.bf16.msra.mxu0 %v2876_v52 }
 0x55e   : > { %2644 = vmatpush3.bf16.msra.mxu1 %v2873_v50  ;;  %2655 = vmatprep.subr.bf16.mxu0 %v3268_v44 }
 0x55f   : > { %2645 = vmatprep.subr.bf16.mxu1 %v3268_v44 }
 0x561   : > { %2656 = vmatpush3.bf16.msra.mxu0 %v2877_v53 }
 0x562   : > { %2646 = vmatpush3.bf16.msra.mxu1 %v2874_v51  ;;  %2657 = vmatprep.subr.bf16.mxu0 %v3268_v44 }
 0x565   : > { %2658 = vmatpush3.bf16.msra.mxu0 %v2878_v54 }
 0x566   : > { %2659 = vmatprep.subr.bf16.mxu0 %v3268_v44 }
 0x569   : > { %2660 = vmatpush3.bf16.msra.mxu0 %v2879_v55 }
 0x56a   : > { %2661 = vmatprep.subr.bf16.mxu0 %v3268_v44 }
 0x56d   : > { %2662 = vmatpush3.bf16.msra.mxu0 %v2880_v56 }
 0x56e   : > { %2663 = vmatprep.subr.bf16.mxu0 %v3268_v44 }
 0x571   : > { %2664 = vmatpush3.bf16.msra.mxu0 %v2881_v3 }
 0x572   : > { %2665 = vmatprep.subr.bf16.mxu0 %v3268_v44 }
 0x575   : > { %2666 = vmatpush3.bf16.msra.mxu0 %v2882_v62 }
 0x62b   : > { %v1923_v57 = vpop.f32.mrb[0].mxu0 }
 0x62c   : > { %v1929_v58 = vpack.c.bf16 %v1923_v57, %v1923_v57  ;;  %v2629_v59 = vpop.f32.mrb[1].mxu0 }
 0x62d   : > { %v1926_v60 = vpop.f32.mrb[2].mxu0 }
 0x62e   : > { %v2630_v61 = vpop.f32.mrb[3].mxu0  ;;  %2648 = vmatmul.mubr.bf16.vlgmr.msra.gmra.mrb[0].mxu1 %v1929_v58 }
 0x701   : > { %v2035_v5 = vpop.f32.mrb[0].mxu1 }
 0x702   : > { %v2036_v0 = vadd.f32 %v2449_v63, %v2035_v5  ;;  %v2649_v1 = vpop.f32.mrb[1].mxu1 }
 0x703   : > { %v2038_v2 = vpop.f32.mrb[2].mxu1 }
 0x704   : > { %v2041_v7 = vmax.f32 %v2036_v0, 0.0  ;;  %v2650_v8 = vpop.f32.mrb[3].mxu1 }
 0x706   : > { %v2042_v9 = vpack.c.bf16 %v2041_v7, %v2041_v7 }
 0x708   : > { %2668 = vmatmul.mubr.bf16.vlgmr.msra.gmra.mrb[4].mxu0 %v2042_v9 }
 0x7db   : > { %v2148_v11 = vpop.f32.mrb[4].mxu0 }
 0x7dc   : > { %v2149_v12 = vadd.f32 %v2458_v10, %v2148_v11  ;;  %v2669_v13 = vpop.f32.mrb[5].mxu0 }
 0x7dd   : > { %v2151_v14 = vpop.f32.mrb[6].mxu0 }
 0x7de   : > { %2154 = vst [vmem:[#allocation18] sm:$0x3] %v2149_v12  ;;  %v2670_v15 = vpop.f32.mrb[7].mxu0 }
 0x7df PF: > { %p2764_p10 = scmp.eq.s32.totalorder %s3402_s29, 2  ;;  %s3270_s1 = smov [#allocation18]  }
 0x7e0   : > { %s2162_s23 = sshll.u32 %s3270_s1, 4  ;;  %s2163_s23 = int_to_ptr.vmem [resolvable:$true] %s2162_s23 }
 0x7e1   : > { %s3171_s17 = scalar_lea.vmem %s2163_s23, 32  ;;  %p3178_p6 = scmp.lt.s32.totalorder %s2163_s23, %s2163_s23 }
 0x7e2   : > { %p3172_p7 = scmp.ne.s32.totalorder %s2163_s23, %s3171_s17  ;;  %p3179_p8 = scmp.lt.s32.totalorder %s3171_s17, %s3171_s17 }
 0x7e4   : > { %p3173_p3 = pnand %p3172_p7, %p2764_p10  ;;  %p3180_p1 = por %p3179_p8, %p3178_p6 }
 0x7e6   : > { %p3174_p4 = pneg %p3173_p3 }
 0x7e8   : > { %p3181_p2 = pnand %p3180_p1, %p3174_p4 }
 0x7ea   : > { %3184 = shalt.err (!%p3181_p2)
}
 0x7eb   : > { %s4133_s14 = sld [smem:[#allocation46_spill]] }
 0x7f1   : > { %s3185_s2 = scalar_lea.hbm %s4133_s14, 32 }
 0x7f2   : > { %p3186_p13 = scmp.ne.s32.totalorder %s4133_s14, %s3185_s2  ;;  %p3191_p9 = scmp.lt.u32.totalorder %s3185_s2, %s4133_s14 }
 0x7f4   : > { %p3187_p12 = pnand %p3186_p13, %p2764_p10 }
 0x7f6   : > { %p3188_p0 = pneg %p3187_p12 }
 0x7f8   : > { %p3193_p5 = pnand %p3191_p9, %p3188_p0 }
 0x7fa   : > { %3196 = shalt.err (!%p3193_p5)
}
 0x7fb   : > { %2716 = dma.vmem_to_hbm [thread:$0]  (%p2764_p10), %s2163_s23, 32, %s4133_s14, [#allocation5]  }
 0x7fc   : > { %3234 = dma.done.wait (%p2764_p10), [#allocation5], 32  }
 0x7fd   : > { %3236 = vsyncadd (%p2764_p10), [#allocation5], 4294967264 }
 0x7fe PF: > { %s4134_s27 = sld [smem:[#allocation27_spill]]  ;;  %s4135_s2 = sld [smem:[#allocation25_spill]] }
 0x7ff   : > { %s4136_s25 = sld [smem:[#allocation26_spill]]  ;;  %s4137_s26 = sld [smem:[#allocation28_spill]] }
 0x804   : > { %p33_p11 = scmp.ge.s32.totalorder %s4134_s27, 5  }
 0x806   :  { %35 = sbr.rel (!%p33_p11) target bundleno = 24 (0x18), region = 217 }
 0x80d   :  { %2175 = vsyncpa [#allocation4], 1 }
 0x80e   :  { %2177 = vsyncpa [#allocation4 + $0x1], 1 }
 0x80f   :  { %2178 = vsyncpa [#allocation7], 1 }
 0x810   :  { %2179 = vsyncpa [#allocation10], 1 }
 0x811   :  { %2180 = vsyncpa [#allocation13], 1 }
 0x812   :  { %2181 = vsyncpa [#allocation5], 1 }
 0x813   :  { %2183 = vsyncpa [#allocation5 + $0x1], 1 }

</bundles_post_ra>
